<compile_context>
chip_gen: v7x
topology: tpu7x:2x2x1
jax: 0.10.0
libtpu: 0.0.40
codegen_flags: <defaults>
</compile_context>

<pallas_src>
import jax
import jax.numpy as jnp
from jax import lax
from jax.experimental import pallas as pl
from jax.experimental.pallas import tpu as pltpu


def _make_kernel(num_modalities: int):
    M = num_modalities

    def kernel(*refs):
        src_refs = refs[:M]              # M x (TB, E)
        trg_refs = refs[M:2 * M]         # M x (TB, E)
        ws_ref = refs[2 * M]             # (E, E)  = (W[:, :E].T) / M
        wt_ref = refs[2 * M + 1]         # (E, E)  = (W[:, E:].T) / M
        b_ref = refs[2 * M + 2]          # (1, E)
        o_ref = refs[2 * M + 3]          # (TB, E)

        # Sum over modalities in f32 (the 1/M mean scale is folded into the
        # pre-scaled weights -> zero per-tile VPU multiplies for the mean).
        src_sum = src_refs[0][...].astype(jnp.float32)
        for r in src_refs[1:]:
            src_sum = src_sum + r[...].astype(jnp.float32)
        trg_sum = trg_refs[0][...].astype(jnp.float32)
        for r in trg_refs[1:]:
            trg_sum = trg_sum + r[...].astype(jnp.float32)

        if ws_ref.dtype == jnp.bfloat16:
            # Cast the (TB, E) operands before the MXU (full rate), f32 acc.
            src_sum = src_sum.astype(jnp.bfloat16)
            trg_sum = trg_sum.astype(jnp.bfloat16)

        # Two K=E matmuls accumulated in f32: no (TB, 2E) concat copy, no
        # trans_b contraction (RHS contracted on its sublane/major axis).
        y = lax.dot_general(
            src_sum, ws_ref[...],
            dimension_numbers=(((1,), (0,)), ((), ())),
            preferred_element_type=jnp.float32)
        y = y + lax.dot_general(
            trg_sum, wt_ref[...],
            dimension_numbers=(((1,), (0,)), ((), ())),
            preferred_element_type=jnp.float32)

        y = y + b_ref[...].astype(jnp.float32)
        o_ref[...] = jnp.maximum(y, 0.0).astype(o_ref.dtype)

    return kernel


def _round_up(x, m):
    return ((x + m - 1) // m) * m


def _vmem_capacity_bytes():
    """Generation-aware VMEM capacity; conservative fallback if unavailable."""
    try:
        info = pltpu.get_tpu_info()
        cap = int(getattr(info, "vmem_capacity_bytes", 0) or 0)
        if cap > 0:
            return cap
    except Exception:
        pass
    return 64 << 20  # v7x per-core VMEM (smallest of the targeted parts)


def _pick_batch_tile(B, E, M, act_itemsize, param_bytes, sublane, budget):
    """Largest sublane-aligned batch tile that (a) leaves at least 2 grid
    steps so the parallel axis can split across TensorCores, and (b) keeps
    the double-buffered working set under the generation-aware budget."""
    if B <= sublane:
        return B

    def fits(tb):
        streamed = 2 * (2 * M + 1) * tb * E * act_itemsize   # in+out, 2 bufs
        scratch = 3 * tb * E * 4                             # f32 sums + acc
        return streamed + param_bytes + scratch + (2 << 20) <= budget

    half = _round_up(pl.cdiv(B, 2), sublane)   # >= 2 grid steps
    tb = min(2048, half)
    tb = _round_up(tb, sublane)
    while tb > sublane and not fits(tb):
        tb = max(_round_up(tb // 2, sublane), sublane)
    return tb


def _build_call(M, B, E, TB, out_dtype, vmem_limit, cost, buffered_params):
    act_spec = pl.BlockSpec((TB, E), lambda i: (i, 0))
    if buffered_params:
        # Constant index_map -> fetched once; single-buffer to save VMEM.
        w_spec = pl.BlockSpec((E, E), lambda i: (0, 0),
                              pipeline_mode=pl.Buffered(1))
        b_spec = pl.BlockSpec((1, E), lambda i: (0, 0),
                              pipeline_mode=pl.Buffered(1))
    else:
        w_spec = pl.BlockSpec((E, E), lambda i: (0, 0))
        b_spec = pl.BlockSpec((1, E), lambda i: (0, 0))

    in_specs = [act_spec] * (2 * M) + [w_spec, w_spec, b_spec]
    out_spec = pl.BlockSpec((TB, E), lambda i: (i, 0))

    return pl.pallas_call(
        _make_kernel(M),
        out_shape=jax.ShapeDtypeStruct((B, E), out_dtype),
        grid_spec=pltpu.PrefetchScalarGridSpec(
            num_scalar_prefetch=0,
            grid=(pl.cdiv(B, TB),),
            in_specs=in_specs,
            out_specs=out_spec,
        ),
        compiler_params=pltpu.CompilerParams(
            dimension_semantics=("parallel",),
            vmem_limit_bytes=vmem_limit),
        cost_estimate=cost,
    )


def concat_pool(src_experts, trg_experts, modalities, weight, bias, *, block_b=None):
    """src_experts/trg_experts: dict modality -> (B, E) array.
    weight: (E, 2E) PyTorch-layout Linear weight, bias: (E,)."""
    srcs = [src_experts[m] for m in modalities]
    trgs = [trg_experts[m] for m in modalities]
    M = len(modalities)
    B, E = srcs[0].shape
    assert weight.shape == (E, 2 * E)

    out_dtype = srcs[0].dtype
    act_itemsize = jnp.dtype(out_dtype).itemsize
    w_itemsize = jnp.dtype(weight.dtype).itemsize
    sublane = 16 if act_itemsize == 2 else 8

    # One-time wrapper-side weight prep: split + transpose so the kernel's
    # contraction hits the RHS sublane axis, and fold the 1/M mean scale in.
    inv_m = 1.0 / M
    w_f32 = weight.astype(jnp.float32)
    ws = (w_f32[:, :E].T * inv_m).astype(weight.dtype)   # (E, E)
    wt = (w_f32[:, E:].T * inv_m).astype(weight.dtype)   # (E, E)
    b2d = bias.reshape(1, E)

    param_bytes = 2 * E * E * w_itemsize + E * jnp.dtype(bias.dtype).itemsize

    cap = _vmem_capacity_bytes()
    budget = int(cap * 0.75)        # ~48 MiB on v7x, ~96 MiB on v5e/v6e
    vmem_ceiling = int(cap * 0.875)

    if block_b is not None:
        TB = B if block_b >= B else min(_round_up(block_b, sublane), B)
    else:
        TB = _pick_batch_tile(B, E, M, act_itemsize, param_bytes, sublane, budget)

    streamed = 2 * (2 * M + 1) * TB * E * act_itemsize
    scratch = 3 * TB * E * 4
    vmem_est = streamed + 2 * param_bytes + scratch + (2 << 20)
    vmem_limit = int(min(max(vmem_est, 32 << 20), vmem_ceiling))

    cost = pl.CostEstimate(
        flops=4 * B * E * E,
        transcendentals=0,
        bytes_accessed=int((2 * M + 1) * B * E * act_itemsize + param_bytes))

    args = (*srcs, *trgs, ws, wt, b2d)
    try:
        return _build_call(M, B, E, TB, out_dtype, vmem_limit, cost, True)(*args)
    except Exception:
        # Fallback for Pallas versions without single-buffered pipeline_mode.
        return _build_call(M, B, E, TB, out_dtype, vmem_limit, cost, False)(*args)


def _reference(src_experts, trg_experts, modalities, weight, bias):
    src = jnp.stack([src_experts[m] for m in modalities], axis=1).mean(axis=1)
    trg = jnp.stack([trg_experts[m] for m in modalities], axis=1).mean(axis=1)
    x = jnp.concatenate([src, trg], axis=-1)
    return jax.nn.relu(x @ weight.T + bias)


if __name__ == "__main__":
    key = jax.random.PRNGKey(0)
    # Small but lane-aligned shapes; B > sublane so the auto tile picker
    # produces >= 2 grid steps (tiled / pipelined / megacore-splittable path).
    B, E = 16, 128
    modalities = ["audio", "video", "text"]
    M = len(modalities)

    keys = jax.random.split(key, 2 * M + 2)
    src_experts = {m: jax.random.normal(keys[i], (B, E), jnp.float32)
                   for i, m in enumerate(modalities)}
    trg_experts = {m: jax.random.normal(keys[M + i], (B, E), jnp.float32)
                   for i, m in enumerate(modalities)}

    # Deterministic Linear(2E -> E) parameters (PyTorch layout: W (E, 2E), b (E,)).
    weight = jax.random.normal(keys[-2], (E, 2 * E), jnp.float32) * 0.1
    bias = jax.random.normal(keys[-1], (E,), jnp.float32) * 0.1

    # f32 path (auto batch-tile selection).
    out = jax.block_until_ready(
        concat_pool(src_experts, trg_experts, modalities, weight, bias))
    ref = _reference(src_experts, trg_experts, modalities, weight, bias)
    assert out.shape == (B, E)
    assert jnp.allclose(out, ref, atol=1e-4, rtol=1e-4), "f32 mismatch vs reference"

    # bf16-weight path (sums cast to bf16 before the MXU; loose tolerance).
    w_bf16 = weight.astype(jnp.bfloat16)
    out_bf16 = jax.block_until_ready(
        concat_pool(src_experts, trg_experts, modalities, w_bf16, bias))
    ref_bf16 = _reference(src_experts, trg_experts, modalities,
                          w_bf16.astype(jnp.float32), bias)
    assert out_bf16.shape == (B, E)
    assert float(jnp.max(jnp.abs(out_bf16 - ref_bf16))) < 0.15, "bf16 mismatch"

    print("KERNEL_OK")
</pallas_src>

<mosaic_0001>
module attributes {stable_mosaic.version = 11 : i64} {
  func.func @kernel(%arg0: i32, %arg1: memref<8x128xf32, #tpu.memory_space<vmem>>, %arg2: memref<8x128xf32, #tpu.memory_space<vmem>>, %arg3: memref<8x128xf32, #tpu.memory_space<vmem>>, %arg4: memref<8x128xf32, #tpu.memory_space<vmem>>, %arg5: memref<8x128xf32, #tpu.memory_space<vmem>>, %arg6: memref<8x128xf32, #tpu.memory_space<vmem>>, %arg7: memref<128x128xf32, #tpu.memory_space<vmem>>, %arg8: memref<128x128xf32, #tpu.memory_space<vmem>>, %arg9: memref<1x128xf32, #tpu.memory_space<vmem>>, %arg10: memref<8x128xf32, #tpu.memory_space<vmem>>) attributes {dimension_semantics = [#tpu.dimension_semantics<parallel>], iteration_bounds = array<i64: 2>, scalar_prefetch = 0 : i64, scratch_operands = 0 : i64, tpu.core_type = #tpu.core_type<tc>, window_params = [{transform_indices = @transform_0, window_bounds = array<i64: 8, 128>}, {transform_indices = @transform_1, window_bounds = array<i64: 8, 128>}, {transform_indices = @transform_2, window_bounds = array<i64: 8, 128>}, {transform_indices = @transform_3, window_bounds = array<i64: 8, 128>}, {transform_indices = @transform_4, window_bounds = array<i64: 8, 128>}, {transform_indices = @transform_5, window_bounds = array<i64: 8, 128>}, {pipeline_mode = #tpu.pipeline_mode<synchronous>, transform_indices = @transform_6, window_bounds = array<i64: 128, 128>}, {pipeline_mode = #tpu.pipeline_mode<synchronous>, transform_indices = @transform_7, window_bounds = array<i64: 128, 128>}, {pipeline_mode = #tpu.pipeline_mode<synchronous>, transform_indices = @transform_8, window_bounds = array<i64: 1, 128>}, {transform_indices = @transform_9, window_bounds = array<i64: 8, 128>}]} {
    %c0 = arith.constant 0 : index
    %c0_0 = arith.constant 0 : index
    %0 = vector.load %arg1[%c0, %c0_0] : memref<8x128xf32, #tpu.memory_space<vmem>>, vector<8x128xf32>
    %c0_1 = arith.constant 0 : index
    %c0_2 = arith.constant 0 : index
    %1 = vector.load %arg2[%c0_1, %c0_2] : memref<8x128xf32, #tpu.memory_space<vmem>>, vector<8x128xf32>
    %2 = arith.addf %0, %1 : vector<8x128xf32>
    %c0_3 = arith.constant 0 : index
    %c0_4 = arith.constant 0 : index
    %3 = vector.load %arg3[%c0_3, %c0_4] : memref<8x128xf32, #tpu.memory_space<vmem>>, vector<8x128xf32>
    %4 = arith.addf %2, %3 : vector<8x128xf32>
    %c0_5 = arith.constant 0 : index
    %c0_6 = arith.constant 0 : index
    %5 = vector.load %arg4[%c0_5, %c0_6] : memref<8x128xf32, #tpu.memory_space<vmem>>, vector<8x128xf32>
    %c0_7 = arith.constant 0 : index
    %c0_8 = arith.constant 0 : index
    %6 = vector.load %arg5[%c0_7, %c0_8] : memref<8x128xf32, #tpu.memory_space<vmem>>, vector<8x128xf32>
    %7 = arith.addf %5, %6 : vector<8x128xf32>
    %c0_9 = arith.constant 0 : index
    %c0_10 = arith.constant 0 : index
    %8 = vector.load %arg6[%c0_9, %c0_10] : memref<8x128xf32, #tpu.memory_space<vmem>>, vector<8x128xf32>
    %9 = arith.addf %7, %8 : vector<8x128xf32>
    %c0_11 = arith.constant 0 : index
    %c0_12 = arith.constant 0 : index
    %10 = vector.load %arg7[%c0_11, %c0_12] : memref<128x128xf32, #tpu.memory_space<vmem>>, vector<128x128xf32>
    %cst = arith.constant dense<0.000000e+00> : vector<8x128xf32>
    %11 = tpu.matmul %4, %10, %cst {dimension_numbers = #tpu.dot_dimension_numbers<[1], [0], [0], [1], [0, 0, 1, 1], [], []>} : vector<8x128xf32>, vector<128x128xf32>, vector<8x128xf32> -> vector<8x128xf32>
    %c0_13 = arith.constant 0 : index
    %c0_14 = arith.constant 0 : index
    %12 = vector.load %arg8[%c0_13, %c0_14] : memref<128x128xf32, #tpu.memory_space<vmem>>, vector<128x128xf32>
    %cst_15 = arith.constant dense<0.000000e+00> : vector<8x128xf32>
    %13 = tpu.matmul %9, %12, %cst_15 {dimension_numbers = #tpu.dot_dimension_numbers<[1], [0], [0], [1], [0, 0, 1, 1], [], []>} : vector<8x128xf32>, vector<128x128xf32>, vector<8x128xf32> -> vector<8x128xf32>
    %14 = arith.addf %11, %13 : vector<8x128xf32>
    %c0_16 = arith.constant 0 : index
    %c0_17 = arith.constant 0 : index
    %15 = vector.load %arg9[%c0_16, %c0_17] : memref<1x128xf32, #tpu.memory_space<vmem>>, vector<1x128xf32>
    %16 = vector.broadcast %15 : vector<1x128xf32> to vector<8x128xf32>
    %17 = arith.addf %14, %16 : vector<8x128xf32>
    %cst_18 = arith.constant 0.000000e+00 : f32
    %18 = vector.broadcast %cst_18 : f32 to vector<8x128xf32>
    %19 = arith.maximumf %17, %18 : vector<8x128xf32>
    %c0_19 = arith.constant 0 : index
    %c0_20 = arith.constant 0 : index
    %20 = vector.load %arg10[%c0_19, %c0_20] : memref<8x128xf32, #tpu.memory_space<vmem>>, vector<8x128xf32>
    tpu.vector_store %arg10[%c0_19, %c0_20], %19 {strides = array<i32>} : memref<8x128xf32, #tpu.memory_space<vmem>>, vector<8x128xf32>,
    return
  }
  func.func @transform_0(%arg0: i32) -> (i32, i32) {
    %c0_i32 = arith.constant 0 : i32
    %c0_i32_0 = arith.constant 0 : i32
    return %arg0, %c0_i32 : i32, i32
  }
  func.func @transform_1(%arg0: i32) -> (i32, i32) {
    %c0_i32 = arith.constant 0 : i32
    %c0_i32_0 = arith.constant 0 : i32
    return %arg0, %c0_i32 : i32, i32
  }
  func.func @transform_2(%arg0: i32) -> (i32, i32) {
    %c0_i32 = arith.constant 0 : i32
    %c0_i32_0 = arith.constant 0 : i32
    return %arg0, %c0_i32 : i32, i32
  }
  func.func @transform_3(%arg0: i32) -> (i32, i32) {
    %c0_i32 = arith.constant 0 : i32
    %c0_i32_0 = arith.constant 0 : i32
    return %arg0, %c0_i32 : i32, i32
  }
  func.func @transform_4(%arg0: i32) -> (i32, i32) {
    %c0_i32 = arith.constant 0 : i32
    %c0_i32_0 = arith.constant 0 : i32
    return %arg0, %c0_i32 : i32, i32
  }
  func.func @transform_5(%arg0: i32) -> (i32, i32) {
    %c0_i32 = arith.constant 0 : i32
    %c0_i32_0 = arith.constant 0 : i32
    return %arg0, %c0_i32 : i32, i32
  }
  func.func @transform_6(%arg0: i32) -> (i32, i32) {
    %c0_i32 = arith.constant 0 : i32
    %c0_i32_0 = arith.constant 0 : i32
    %c0_i32_1 = arith.constant 0 : i32
    return %c0_i32, %c0_i32_0 : i32, i32
  }
  func.func @transform_7(%arg0: i32) -> (i32, i32) {
    %c0_i32 = arith.constant 0 : i32
    %c0_i32_0 = arith.constant 0 : i32
    %c0_i32_1 = arith.constant 0 : i32
    return %c0_i32, %c0_i32_0 : i32, i32
  }
  func.func @transform_8(%arg0: i32) -> (i32, i32) {
    %c0_i32 = arith.constant 0 : i32
    %c0_i32_0 = arith.constant 0 : i32
    %c0_i32_1 = arith.constant 0 : i32
    return %c0_i32, %c0_i32_0 : i32, i32
  }
  func.func @transform_9(%arg0: i32) -> (i32, i32) {
    %c0_i32 = arith.constant 0 : i32
    %c0_i32_0 = arith.constant 0 : i32
    return %arg0, %c0_i32 : i32, i32
  }
}

module attributes {stable_mosaic.version = 11 : i64} {
  func.func @kernel(%arg0: i32, %arg1: memref<8x128xf32, #tpu.memory_space<vmem>>, %arg2: memref<8x128xf32, #tpu.memory_space<vmem>>, %arg3: memref<8x128xf32, #tpu.memory_space<vmem>>, %arg4: memref<8x128xf32, #tpu.memory_space<vmem>>, %arg5: memref<8x128xf32, #tpu.memory_space<vmem>>, %arg6: memref<8x128xf32, #tpu.memory_space<vmem>>, %arg7: memref<128x128xf32, #tpu.memory_space<vmem>>, %arg8: memref<128x128xf32, #tpu.memory_space<vmem>>, %arg9: memref<1x128xf32, #tpu.memory_space<vmem>>, %arg10: memref<8x128xf32, #tpu.memory_space<vmem>>) attributes {dimension_semantics = [#tpu.dimension_semantics<parallel>], iteration_bounds = array<i64: 2>, scalar_prefetch = 0 : i64, scratch_operands = 0 : i64, tpu.core_type = #tpu.core_type<tc>, window_params = [{transform_indices = @transform_0, window_bounds = array<i64: 8, 128>}, {transform_indices = @transform_1, window_bounds = array<i64: 8, 128>}, {transform_indices = @transform_2, window_bounds = array<i64: 8, 128>}, {transform_indices = @transform_3, window_bounds = array<i64: 8, 128>}, {transform_indices = @transform_4, window_bounds = array<i64: 8, 128>}, {transform_indices = @transform_5, window_bounds = array<i64: 8, 128>}, {pipeline_mode = #tpu.pipeline_mode<synchronous>, transform_indices = @transform_6, window_bounds = array<i64: 128, 128>}, {pipeline_mode = #tpu.pipeline_mode<synchronous>, transform_indices = @transform_7, window_bounds = array<i64: 128, 128>}, {pipeline_mode = #tpu.pipeline_mode<synchronous>, transform_indices = @transform_8, window_bounds = array<i64: 1, 128>}, {transform_indices = @transform_9, window_bounds = array<i64: 8, 128>}]} {
    %c0 = arith.constant 0 : index
    %c0_0 = arith.constant 0 : index
    %0 = vector.load %arg1[%c0, %c0_0] : memref<8x128xf32, #tpu.memory_space<vmem>>, vector<8x128xf32>
    %c0_1 = arith.constant 0 : index
    %c0_2 = arith.constant 0 : index
    %1 = vector.load %arg2[%c0_1, %c0_2] : memref<8x128xf32, #tpu.memory_space<vmem>>, vector<8x128xf32>
    %2 = arith.addf %0, %1 : vector<8x128xf32>
    %c0_3 = arith.constant 0 : index
    %c0_4 = arith.constant 0 : index
    %3 = vector.load %arg3[%c0_3, %c0_4] : memref<8x128xf32, #tpu.memory_space<vmem>>, vector<8x128xf32>
    %4 = arith.addf %2, %3 : vector<8x128xf32>
    %c0_5 = arith.constant 0 : index
    %c0_6 = arith.constant 0 : index
    %5 = vector.load %arg4[%c0_5, %c0_6] : memref<8x128xf32, #tpu.memory_space<vmem>>, vector<8x128xf32>
    %c0_7 = arith.constant 0 : index
    %c0_8 = arith.constant 0 : index
    %6 = vector.load %arg5[%c0_7, %c0_8] : memref<8x128xf32, #tpu.memory_space<vmem>>, vector<8x128xf32>
    %7 = arith.addf %5, %6 : vector<8x128xf32>
    %c0_9 = arith.constant 0 : index
    %c0_10 = arith.constant 0 : index
    %8 = vector.load %arg6[%c0_9, %c0_10] : memref<8x128xf32, #tpu.memory_space<vmem>>, vector<8x128xf32>
    %9 = arith.addf %7, %8 : vector<8x128xf32>
    %c0_11 = arith.constant 0 : index
    %c0_12 = arith.constant 0 : index
    %10 = vector.load %arg7[%c0_11, %c0_12] : memref<128x128xf32, #tpu.memory_space<vmem>>, vector<128x128xf32>
    %cst = arith.constant dense<0.000000e+00> : vector<8x128xf32>
    %11 = tpu.matmul %4, %10, %cst {dimension_numbers = #tpu.dot_dimension_numbers<[1], [0], [0], [1], [0, 0, 1, 1], [], []>} : vector<8x128xf32>, vector<128x128xf32>, vector<8x128xf32> -> vector<8x128xf32>
    %c0_13 = arith.constant 0 : index
    %c0_14 = arith.constant 0 : index
    %12 = vector.load %arg8[%c0_13, %c0_14] : memref<128x128xf32, #tpu.memory_space<vmem>>, vector<128x128xf32>
    %cst_15 = arith.constant dense<0.000000e+00> : vector<8x128xf32>
    %13 = tpu.matmul %9, %12, %cst_15 {dimension_numbers = #tpu.dot_dimension_numbers<[1], [0], [0], [1], [0, 0, 1, 1], [], []>} : vector<8x128xf32>, vector<128x128xf32>, vector<8x128xf32> -> vector<8x128xf32>
    %14 = arith.addf %11, %13 : vector<8x128xf32>
    %c0_16 = arith.constant 0 : index
    %c0_17 = arith.constant 0 : index
    %15 = vector.load %arg9[%c0_16, %c0_17] : memref<1x128xf32, #tpu.memory_space<vmem>>, vector<1x128xf32>
    %16 = vector.broadcast %15 : vector<1x128xf32> to vector<8x128xf32>
    %17 = arith.addf %14, %16 : vector<8x128xf32>
    %cst_18 = arith.constant 0.000000e+00 : f32
    %18 = vector.broadcast %cst_18 : f32 to vector<8x128xf32>
    %19 = arith.maximumf %17, %18 : vector<8x128xf32>
    %c0_19 = arith.constant 0 : index
    %c0_20 = arith.constant 0 : index
    %20 = vector.load %arg10[%c0_19, %c0_20] : memref<8x128xf32, #tpu.memory_space<vmem>>, vector<8x128xf32>
    tpu.vector_store %arg10[%c0_19, %c0_20], %19 {strides = array<i32>} : memref<8x128xf32, #tpu.memory_space<vmem>>, vector<8x128xf32>,
    return
  }
  func.func @transform_0(%arg0: i32) -> (i32, i32) {
    %c0_i32 = arith.constant 0 : i32
    %c0_i32_0 = arith.constant 0 : i32
    return %arg0, %c0_i32 : i32, i32
  }
  func.func @transform_1(%arg0: i32) -> (i32, i32) {
    %c0_i32 = arith.constant 0 : i32
    %c0_i32_0 = arith.constant 0 : i32
    return %arg0, %c0_i32 : i32, i32
  }
  func.func @transform_2(%arg0: i32) -> (i32, i32) {
    %c0_i32 = arith.constant 0 : i32
    %c0_i32_0 = arith.constant 0 : i32
    return %arg0, %c0_i32 : i32, i32
  }
  func.func @transform_3(%arg0: i32) -> (i32, i32) {
    %c0_i32 = arith.constant 0 : i32
    %c0_i32_0 = arith.constant 0 : i32
    return %arg0, %c0_i32 : i32, i32
  }
  func.func @transform_4(%arg0: i32) -> (i32, i32) {
    %c0_i32 = arith.constant 0 : i32
    %c0_i32_0 = arith.constant 0 : i32
    return %arg0, %c0_i32 : i32, i32
  }
  func.func @transform_5(%arg0: i32) -> (i32, i32) {
    %c0_i32 = arith.constant 0 : i32
    %c0_i32_0 = arith.constant 0 : i32
    return %arg0, %c0_i32 : i32, i32
  }
  func.func @transform_6(%arg0: i32) -> (i32, i32) {
    %c0_i32 = arith.constant 0 : i32
    %c0_i32_0 = arith.constant 0 : i32
    %c0_i32_1 = arith.constant 0 : i32
    return %c0_i32, %c0_i32_0 : i32, i32
  }
  func.func @transform_7(%arg0: i32) -> (i32, i32) {
    %c0_i32 = arith.constant 0 : i32
    %c0_i32_0 = arith.constant 0 : i32
    %c0_i32_1 = arith.constant 0 : i32
    return %c0_i32, %c0_i32_0 : i32, i32
  }
  func.func @transform_8(%arg0: i32) -> (i32, i32) {
    %c0_i32 = arith.constant 0 : i32
    %c0_i32_0 = arith.constant 0 : i32
    %c0_i32_1 = arith.constant 0 : i32
    return %c0_i32, %c0_i32_0 : i32, i32
  }
  func.func @transform_9(%arg0: i32) -> (i32, i32) {
    %c0_i32 = arith.constant 0 : i32
    %c0_i32_0 = arith.constant 0 : i32
    return %arg0, %c0_i32 : i32, i32
  }
}

</mosaic_0001>

<bundles_post_ra>
// kernel: tpu_custom_call.1
= control target key start
LH: loop header
LB: loop body
LE: loop exit
PB: predicated region body
PF: predicated region fallthrough
CT: control target
= control target key end

     0   :  { %s1967_s0 = inlined_call_operand.hbm [shape: f32[16,128], index: 0, kind: input, shape index: {}]   ;;  %s1968_s1 = inlined_call_operand.hbm [shape: f32[16,128], index: 1, kind: input, shape index: {}]   ;;  %s1969_s2 = inlined_call_operand.hbm [shape: f32[16,128], index: 2, kind: input, shape index: {}]   ;;  %s1970_s3 = inlined_call_operand.hbm [shape: f32[16,128], index: 3, kind: input, shape index: {}]   ;;  %s1971_s4 = inlined_call_operand.hbm [shape: f32[16,128], index: 4, kind: input, shape index: {}]   ;;  %s1972_s5 = inlined_call_operand.vmem [shape: f32[16,128], index: 5, kind: input, shape index: {}]   ;;  %s1973_s6 = inlined_call_operand.hbm [shape: f32[128,128], index: 6, kind: input, shape index: {}]   ;;  %s1974_s7 = inlined_call_operand.hbm [shape: f32[128,128], index: 7, kind: input, shape index: {}]   ;;  %s1975_s8 = inlined_call_operand.vmem [shape: f32[1,128], index: 8, kind: input, shape index: {}]   ;;  %s1976_s9 = inlined_call_operand.hbm [shape: f32[16,128], index: 9, kind: output, shape index: {}]  }
   0x1   :  { %1999 = sst [smem:[#allocation25_spill]] %s1967_s0 }
   0x2   :  { %2000 = sst [smem:[#allocation26_spill]] %s1968_s1 }
   0x3   :  { %2001 = sst [smem:[#allocation27_spill]] %s1970_s3 }
   0x4   :  { %2002 = sst [smem:[#allocation28_spill]] %s1973_s6 }
   0x5   :  { %2003 = sst [smem:[#allocation29_spill]] %s1975_s8 }
   0x6   :  { %2004 = sst [smem:[#allocation30_spill]] %s1976_s9 }
   0x7   :  { %14 = vsyncpa [#allocation3], 0 }
   0x8   :  { %16 = vsyncpa [#allocation3 + $0x1], 0 }
   0x9   :  { %17 = vsyncpa [#allocation6], 0 }
   0xa   :  { %19 = vsyncpa [#allocation6 + $0x1], 0 }
   0xb   :  { %20 = vsyncpa [#allocation9], 0 }
   0xc   :  { %22 = vsyncpa [#allocation9 + $0x1], 0 }
   0xd   :  { %23 = vsyncpa [#allocation12], 0 }
   0xe   :  { %24 = vsyncpa [#allocation4], 0 }
   0xf   :  { %26 = vsyncpa [#allocation4 + $0x1], 0  ;;  %s1552_s30 = smov 0   ;;  %s1554_s10 = smov 0  }
  0x10   :  { %s1556_s11 = smov 0   ;;  %s1558_s12 = smov 0  }
  0x11 LB: > { %2005 = sst [smem:[#allocation20_spill]] %s1475_s30  ;;  %s1573_s13 = sadd.s32 4294967295, %s1487_s12   ;;  %s1487_s12 = sphi %s1558_s12, %s2045_s12   ;;  %s1483_s11 = sphi %s1556_s11, %s2049_s11   ;;  %s1479_s10 = sphi %s1554_s10, %s2048_s10   ;;  %s1475_s30 = sphi %s1552_s30, %s2047_s30  }
  0x12   : > { %s929_s14 = sadd.s32 4294967294, %s1487_s12   ;;  %p52_p0 = scmp.ne.s32.totalorder %s1479_s10, %s1475_s30 }
  0x13   : > { %p1977_p1 = scmp.eq.s32.totalorder %s1573_s13, 0  ;;  %p275_p3 = scmp.eq.s32.totalorder %s929_s14, 1 }
  0x14   : > { %p930_p5 = scmp.ge.s32.totalorder %s1487_s12, 1  ;;  %p282_p7 = scmp.lt.s32.totalorder %s1487_s12, 3 }
  0x15   : > { %p1582_p4 = por %p1977_p1, %p52_p0  ;;  %p1587_p6 = por %p275_p3, %p52_p0 }
  0x16   : > { %p1592_p8 = pnand %p930_p5, %p282_p7  ;;  %s1489_s18 = smov [#allocation11]  }
  0x17   : > { %s2006_s15 = scalar_select %p1582_p4, 1, 0 }
  0x18   : > { %s2007_s16 = scalar_select %p1587_p6, 1, 0 }
  0x19   : > { %s2009_s17 = scalar_select %p1592_p8, 1, 0 }
  0x1a   : > { %2008 = sst [smem:[#allocation21_spill]] %s2007_s16  ;;  %s294_s19 = sshll.u32 %s1489_s18, 4  ;;  %s1596_s19 = int_to_ptr.vmem [resolvable:$true] %s294_s19 }
  0x1b   : > { %p1131_p9 = pneg %p1592_p8  ;;  %s1608_s21 = sadd.s32 1, %s1487_s12  }
  0x1c   : > { %2011 = sst [smem:[#allocation22_spill]] %s1608_s21  ;;  %s39_s22 = sadd.s32 1, %s1483_s11 }
  0x1d   : > { %p1603_p11 = pnand %p1131_p9, %p1977_p1  ;;  %s36_s23 = ssub.s32 %s1487_s12, %s1608_s21 }
  0x1e   : > { %s2012_s6 = sld [smem:[#allocation28_spill]] }
  0x1f   : > { %s2010_s20 = scalar_select %p1603_p11, 1, 0 }
  0x20   : > { %p1985_p13 = pneg %p1603_p11 }
  0x24   : > { %s1203_s26 = scalar_lea.hbm %s2012_s6, 2048 }
  0x25   : > { %p1204_p12 = scmp.ne.s32.totalorder %s2012_s6, %s1203_s26  ;;  %p1210_p5 = scmp.lt.u32.totalorder %s1203_s26, %s2012_s6 }
  0x27   : > { %p1206_p0 = pnand %p1985_p13, %p1204_p12 }
  0x29   : > { %p1207_p3 = pneg %p1206_p0 }
  0x2b   : > { %p1212_p7 = pnand %p1210_p5, %p1207_p3 }
  0x2d   : > { %1215 = shalt.err (!%p1212_p7)
}
  0x2e   : > { %s1216_s18 = scalar_lea.vmem %s1596_s19, 2048  ;;  %p1224_p2 = scmp.lt.s32.totalorder %s1596_s19, %s1596_s19 }
  0x2f   : > { %p1217_p9 = scmp.ne.s32.totalorder %s1596_s19, %s1216_s18  ;;  %p1225_p12 = scmp.lt.s32.totalorder %s1216_s18, %s1216_s18 }
  0x31   : > { %p1219_p10 = pnand %p1217_p9, %p1985_p13  ;;  %p1226_p0 = por %p1225_p12, %p1224_p2 }
  0x33   : > { %p1220_p1 = pneg %p1219_p10 }
  0x35   : > { %p1227_p6 = pnand %p1226_p0, %p1220_p1 }
  0x37   : > { %1230 = shalt.err (!%p1227_p6)
}
  0x38   : > { %s1978_s24 = smov 128   ;;  %s1979_s25 = smov 8  }
  0x39   : > { %1134 = dma.hbm_to_vmem [thread:$0]  (!%p1603_p11), %s2012_s6, 2048, %s1596_s19, [#allocation12], %s1978_s24, %s1978_s24, %s1979_s25  }
  0x3a   : > { %p37_p1 = scmp.eq.s32.totalorder %s36_s23, 0  ;;  %p46_p2 = scmp.ne.s32.totalorder %s1483_s11, %s1479_s10 }
  0x3b   : > { %p47_p6 = scmp.eq.s32.totalorder %s1487_s12, 0  ;;  %p1160_p10 = scmp.lt.s32.totalorder %s1487_s12, 2 }
  0x3c   : > { %s1648_s28 = scalar_select %p37_p1, %s1483_s11, %s39_s22  }
  0x3d   : > { %p48_p3 = por %p47_p6, %p46_p2  ;;  %p2014_p5 = scmp.eq.s32.totalorder %s1573_s13, 1 }
  0x3e   : > { %2013 = sst [smem:[#allocation23_spill]] %s1648_s28  ;;  %s1980_s14 = sand.u32 1, %s1483_s11  }
  0x3f   : > { %p1652_p7 = por %p2014_p5, %p46_p2  ;;  %s1658_s18 = sshll.u32 %s1487_s12, 7 }
  0x40   : > { %s1662_s26 = sshll.u32 %s1980_s14, 3  ;;  %p1664_p9 = pnand %p1160_p10, %p48_p3 }
  0x41   : > { %s2015_s29 = scalar_select %p1652_p7, 1, 0 }
  0x42   : > { %s2017_s19 = scalar_select %p1664_p9, 1, 0 }
  0x43   : > { %2016 = sst [smem:[#allocation24_spill]] %s2015_s29  ;;  %s1987_s22 = sand.u32 1, %s1487_s12  }
  0x44   : > { %s2018_s1 = sld [smem:[#allocation26_spill]]  ;;  %s346_s25 = scalar_lea.vmem [#allocation5], %s1662_s26 }
  0x45   : > { %s353_s6 = sshll.u32 %s346_s25, 4  ;;  %s1680_s14 = scalar_lea.sflag [#allocation6], %s1987_s22  ;;  %s1676_s6 = int_to_ptr.vmem [resolvable:$true] %s353_s6 }
  0x46   : > { %p1686_p0 = pneg %p1664_p9 }
  0x48   : > { %s2019_s21 = scalar_select %p1686_p0, 1, 0 }
  0x4a   : > { %s1673_s24 = scalar_lea.hbm %s2018_s1, %s1658_s18  ;;  %s1236_s25 = scalar_lea.hbm %s2018_s1, 256 }
  0x4b   : > { %s1231_s28 = scalar_lea.hbm %s1673_s24, 128  ;;  %p1237_p6 = scmp.lt.u32.totalorder %s1673_s24, %s2018_s1 }
  0x4c   : > { %p1232_p12 = scmp.ne.s32.totalorder %s1673_s24, %s1231_s28  ;;  %p1238_p10 = scmp.lt.u32.totalorder %s1236_s25, %s1231_s28 }
  0x4d   : > { %p1240_p5 = scmp.lt.u32.totalorder %s1231_s28, %s1673_s24 }
  0x4e   : > { %p1234_p1 = pnand %p1686_p0, %p1232_p12  ;;  %p1239_p3 = por %p1238_p10, %p1237_p6 }
  0x50   : > { %p1235_p2 = pneg %p1234_p1  ;;  %p1241_p13 = por %p1240_p5, %p1239_p3 }
  0x52   : > { %p1242_p7 = pnand %p1241_p13, %p1235_p2 }
  0x54   : > { %1245 = shalt.err (!%p1242_p7)
}
  0x55   : > { %s1246_s22 = scalar_lea.vmem %s1676_s6, 128  ;;  %s1492_s23 = smov [#allocation5]  }
  0x56   : > { %p1247_p12 = scmp.ne.s32.totalorder %s1676_s6, %s1246_s22  ;;  %s1251_s27 = sshll.u32 %s1492_s23, 4  ;;  %s1252_s27 = int_to_ptr.vmem [resolvable:$false] %s1251_s27 }
  0x57   : > { %s1253_s30 = scalar_lea.vmem %s1252_s27, 256  ;;  %p1254_p8 = scmp.lt.s32.totalorder %s1676_s6, %s1252_s27 }
  0x58   : > { %p1249_p1 = pnand %p1247_p12, %p1686_p0  ;;  %p1255_p11 = scmp.lt.s32.totalorder %s1253_s30, %s1246_s22 }
  0x5a   : > { %p1250_p4 = pneg %p1249_p1  ;;  %p1256_p6 = por %p1255_p11, %p1254_p8 }
  0x5c   : > { %p1257_p10 = pnand %p1256_p6, %p1250_p4 }
  0x5e   : > { %1260 = shalt.err (!%p1257_p10)
}
  0x5f   : > { %1144 = dma.hbm_to_vmem [thread:$0]  (!%p1664_p9), %s1673_s24, 128, %s1676_s6, %s1680_s14  }
  0x60   : > { %s2020_s3 = sld [smem:[#allocation27_spill]]  ;;  %s382_s22 = scalar_lea.vmem [#allocation8], %s1662_s26 }
  0x61   : > { %s389_s23 = sshll.u32 %s382_s22, 4  ;;  %s1493_s27 = smov [#allocation13]   ;;  %s1717_s23 = int_to_ptr.vmem [resolvable:$true] %s389_s23 }
  0x62   : > { %s1719_s30 = sshll.u32 %s1493_s27, 4  ;;  %s2021_s1 = sand.u32 1, %s1487_s12   ;;  %s308_s30 = int_to_ptr.vmem [resolvable:$true] %s1719_s30 }
  0x63   : > { %s1723_s9 = scalar_lea.sflag [#allocation9], %s2021_s1 }
  0x66   : > { %s1714_s25 = scalar_lea.hbm %s2020_s3, %s1658_s18  ;;  %s1266_s28 = scalar_lea.hbm %s2020_s3, 256 }
  0x67   : > { %s1261_s6 = scalar_lea.hbm %s1714_s25, 128  ;;  %p1267_p13 = scmp.lt.u32.totalorder %s1714_s25, %s2020_s3 }
  0x68   : > { %p1262_p4 = scmp.ne.s32.totalorder %s1714_s25, %s1261_s6  ;;  %p1268_p7 = scmp.lt.u32.totalorder %s1266_s28, %s1261_s6 }
  0x69   : > { %p1270_p3 = scmp.lt.u32.totalorder %s1261_s6, %s1714_s25 }
  0x6a   : > { %p1264_p8 = pnand %p1262_p4, %p1686_p0  ;;  %p1269_p2 = por %p1268_p7, %p1267_p13 }
  0x6c   : > { %p1265_p11 = pneg %p1264_p8  ;;  %p1271_p5 = por %p1270_p3, %p1269_p2 }
  0x6e   : > { %p1272_p12 = pnand %p1271_p5, %p1265_p11 }
  0x70   : > { %1275 = shalt.err (!%p1272_p12)
}
  0x71   : > { %s1276_s1 = scalar_lea.vmem %s1717_s23, 128  ;;  %s1494_s22 = smov [#allocation8]  }
  0x72   : > { %p1277_p1 = scmp.ne.s32.totalorder %s1717_s23, %s1276_s1  ;;  %s1281_s27 = sshll.u32 %s1494_s22, 4  ;;  %s1282_s27 = int_to_ptr.vmem [resolvable:$false] %s1281_s27 }
  0x73   : > { %s1283_s8 = scalar_lea.vmem %s1282_s27, 256  ;;  %p1284_p4 = scmp.lt.s32.totalorder %s1717_s23, %s1282_s27 }
  0x74   : > { %p1279_p6 = pnand %p1277_p1, %p1686_p0  ;;  %p1285_p8 = scmp.lt.s32.totalorder %s1283_s8, %s1276_s1 }
  0x76   : > { %p1280_p10 = pneg %p1279_p6  ;;  %p1286_p13 = por %p1285_p8, %p1284_p4 }
  0x78   : > { %p1287_p7 = pnand %p1286_p13, %p1280_p10 }
  0x7a   : > { %1290 = shalt.err (!%p1287_p7)
}
  0x7b   : > { %1150 = dma.hbm_to_vmem [thread:$0]  (!%p1664_p9), %s1714_s25, 128, %s1717_s23, %s1723_s9  }
  0x7c   : > { %s1291_s24 = scalar_lea.hbm %s1974_s7, 2048  ;;  %p2022_p2 = scmp.ne.s32.totalorder %s2010_s20, 0 }
  0x7d   : > { %p1292_p11 = scmp.ne.s32.totalorder %s1974_s7, %s1291_s24  ;;  %p1298_p1 = scmp.lt.u32.totalorder %s1291_s24, %s1974_s7 }
  0x7e   : > { %p2023_p3 = pneg %p2022_p2 }
  0x80   : > { %p1294_p5 = pnand %p1292_p11, %p2023_p3 }
  0x82   : > { %p1295_p12 = pneg %p1294_p5 }
  0x84   : > { %p1300_p6 = pnand %p1298_p1, %p1295_p12 }
  0x86   : > { %1303 = shalt.err (!%p1300_p6)
}
  0x87   : > { %s1304_s25 = scalar_lea.vmem %s308_s30, 2048  ;;  %p2024_p4 = pmov %p2023_p3 }
  0x88   : > { %p1305_p10 = scmp.ne.s32.totalorder %s308_s30, %s1304_s25  ;;  %p1312_p7 = scmp.lt.s32.totalorder %s308_s30, %s308_s30 }
  0x89   : > { %p1313_p9 = scmp.lt.s32.totalorder %s1304_s25, %s1304_s25 }
  0x8a   : > { %p1307_p8 = pnand %p1305_p10, %p2024_p4 }
  0x8b   : > { %p1314_p0 = por %p1313_p9, %p1312_p7 }
  0x8c   : > { %p1308_p13 = pneg %p1307_p8 }
  0x8e   : > { %p1315_p3 = pnand %p1314_p0, %p1308_p13 }
  0x90   : > { %1318 = shalt.err (!%p1315_p3)
}
  0x91   : > { %s2025_s23 = smov 8   ;;  %s2026_s27 = smov 128  }
  0x92   : > { %1137 = dma.hbm_to_vmem [thread:$0]  (!%p2022_p2), %s1974_s7, 2048, %s308_s30, [#allocation12], %s2026_s27, %s2026_s27, %s2025_s23  }
  0x93   : > { %s2027_s0 = sld [smem:[#allocation25_spill]]  ;;  %s328_s20 = scalar_lea.vmem [#allocation2], %s1662_s26 }
  0x94   : > { %s335_s28 = sshll.u32 %s328_s20, 4  ;;  %s1784_s25 = scalar_lea.hbm %s1969_s2, %s1658_s18  ;;  %s1778_s28 = int_to_ptr.vmem [resolvable:$true] %s335_s28 }
  0x95   : > { %s2028_s8 = sand.u32 1, %s1483_s11   ;;  %p2029_p0 = scmp.ne.s32.totalorder %s2019_s21, 0 }
  0x96   : > { %s325_s30 = scalar_lea.sflag [#allocation3], %s2028_s8 }
  0x99   : > { %s1775_s16 = scalar_lea.hbm %s2027_s0, %s1658_s18  ;;  %s1324_s6 = scalar_lea.hbm %s2027_s0, 256 }
  0x9a   : > { %s1319_s23 = scalar_lea.hbm %s1775_s16, 128  ;;  %p1325_p5 = scmp.lt.u32.totalorder %s1775_s16, %s2027_s0 }
  0x9b   : > { %p1320_p9 = scmp.ne.s32.totalorder %s1775_s16, %s1319_s23  ;;  %p1326_p12 = scmp.lt.u32.totalorder %s1324_s6, %s1319_s23 }
  0x9c   : > { %p1328_p6 = scmp.lt.u32.totalorder %s1319_s23, %s1775_s16 }
  0x9d   : > { %p1322_p11 = pnand %p1320_p9, %p2029_p0  ;;  %p1327_p1 = por %p1326_p12, %p1325_p5 }
  0x9f   : > { %p1323_p2 = pneg %p1322_p11  ;;  %p1329_p10 = por %p1328_p6, %p1327_p1 }
  0xa1   : > { %p1330_p4 = pnand %p1329_p10, %p1323_p2 }
  0xa3   : > { %1333 = shalt.err (!%p1330_p4)
}
  0xa4   : > { %s1334_s1 = scalar_lea.vmem %s1778_s28, 128  ;;  %s1495_s22 = smov [#allocation2]  }
  0xa5   : > { %p1335_p8 = scmp.ne.s32.totalorder %s1778_s28, %s1334_s1  ;;  %s1339_s8 = sshll.u32 %s1495_s22, 4  ;;  %s1340_s8 = int_to_ptr.vmem [resolvable:$false] %s1339_s8 }
  0xa6   : > { %s1341_s27 = scalar_lea.vmem %s1340_s8, 256  ;;  %p1342_p3 = scmp.lt.s32.totalorder %s1778_s28, %s1340_s8 }
  0xa7   : > { %p1337_p13 = pnand %p1335_p8, %p2029_p0  ;;  %p1343_p9 = scmp.lt.s32.totalorder %s1341_s27, %s1334_s1 }
  0xa9   : > { %p1338_p7 = pneg %p1337_p13  ;;  %p1344_p11 = por %p1343_p9, %p1342_p3 }
  0xab   : > { %p1345_p5 = pnand %p1344_p11, %p1338_p7 }
  0xad   : > { %1348 = shalt.err (!%p1345_p5)
}
  0xae   : > { %p2030_p2 = scmp.ne.s32.totalorder %s2017_s19, 0  ;;  %s364_s23 = scalar_lea.vmem [#allocation7], %s1662_s26 }
  0xaf   : > { %s371_s29 = sshll.u32 %s364_s23, 4  ;;  %s1814_s20 = scalar_lea.hbm %s1971_s4, %s1658_s18  ;;  %s372_s29 = int_to_ptr.vmem [resolvable:$true] %s371_s29 }
  0xb0   : > { %1141 = dma.hbm_to_vmem [thread:$0]  (!%p2030_p2), %s1775_s16, 128, %s1778_s28, %s325_s30  }
  0xb1   : > { %s1349_s1 = scalar_lea.hbm %s1784_s25, 128  ;;  %s1354_s27 = scalar_lea.hbm %s1969_s2, 256 }
  0xb2   : > { %p1350_p12 = scmp.ne.s32.totalorder %s1784_s25, %s1349_s1  ;;  %p1355_p10 = scmp.lt.u32.totalorder %s1784_s25, %s1969_s2 }
  0xb3   : > { %p1356_p4 = scmp.lt.u32.totalorder %s1354_s27, %s1349_s1  ;;  %p1358_p13 = scmp.lt.u32.totalorder %s1349_s1, %s1784_s25 }
  0xb4   : > { %p1352_p1 = pnand %p1350_p12, %p2029_p0 }
  0xb5   : > { %p1357_p8 = por %p1356_p4, %p1355_p10 }
  0xb6   : > { %p1353_p6 = pneg %p1352_p1 }
  0xb7   : > { %p1359_p7 = por %p1358_p13, %p1357_p8 }
  0xb9   : > { %p1360_p3 = pnand %p1359_p7, %p1353_p6 }
  0xbb   : > { %1363 = shalt.err (!%p1360_p3)
}
  0xbc   : > { %s1364_s18 = scalar_lea.vmem %s372_s29, 128  ;;  %s1496_s16 = smov [#allocation7]  }
  0xbd   : > { %p1365_p9 = scmp.ne.s32.totalorder %s372_s29, %s1364_s18  ;;  %s1369_s28 = sshll.u32 %s1496_s16, 4  ;;  %s1370_s28 = int_to_ptr.vmem [resolvable:$false] %s1369_s28 }
  0xbe   : > { %s1371_s30 = scalar_lea.vmem %s1370_s28, 256  ;;  %p1372_p12 = scmp.lt.s32.totalorder %s372_s29, %s1370_s28 }
  0xbf   : > { %p1367_p11 = pnand %p1365_p9, %p2029_p0  ;;  %p1373_p1 = scmp.lt.s32.totalorder %s1371_s30, %s1364_s18 }
  0xc1   : > { %p1368_p5 = pneg %p1367_p11  ;;  %p1374_p2 = por %p1373_p1, %p1372_p12 }
  0xc3   : > { %p1375_p4 = pnand %p1374_p2, %p1368_p5 }
  0xc5   : > { %1378 = shalt.err (!%p1375_p4)
}
  0xc6   : > { %p2031_p10 = scmp.ne.s32.totalorder %s2017_s19, 0  ;;  %s400_s0 = scalar_lea.vmem [#allocation10], %s1662_s26 }
  0xc7   : > { %s407_s3 = sshll.u32 %s400_s0, 4  ;;  %s1379_s23 = scalar_lea.hbm %s1814_s20, 128  ;;  %s408_s3 = int_to_ptr.vmem [resolvable:$true] %s407_s3 }
  0xc8   : > { %1147 = dma.hbm_to_vmem [thread:$0]  (!%p2031_p10), %s1784_s25, 128, %s372_s29, %s1680_s14  }
  0xc9   : > { %p1380_p6 = scmp.ne.s32.totalorder %s1814_s20, %s1379_s23  ;;  %s1384_s1 = scalar_lea.hbm %s1971_s4, 256 }
  0xca   : > { %p1385_p13 = scmp.lt.u32.totalorder %s1814_s20, %s1971_s4  ;;  %p1386_p7 = scmp.lt.u32.totalorder %s1384_s1, %s1379_s23 }
  0xcb   : > { %p1382_p8 = pnand %p1380_p6, %p2029_p0  ;;  %p1388_p9 = scmp.lt.u32.totalorder %s1379_s23, %s1814_s20 }
  0xcc   : > { %p1387_p3 = por %p1386_p7, %p1385_p13 }
  0xcd   : > { %p1383_p2 = pneg %p1382_p8 }
  0xce   : > { %p1389_p11 = por %p1388_p9, %p1387_p3 }
  0xd0   : > { %p1390_p5 = pnand %p1389_p11, %p1383_p2 }
  0xd2   : > { %1393 = shalt.err (!%p1390_p5)
}
  0xd3   : > { %s1394_s14 = scalar_lea.vmem %s408_s3, 128  ;;  %s1497_s26 = smov [#allocation10]  }
  0xd4   : > { %p1395_p12 = scmp.ne.s32.totalorder %s408_s3, %s1394_s14  ;;  %s1399_s25 = sshll.u32 %s1497_s26, 4  ;;  %s1400_s25 = int_to_ptr.vmem [resolvable:$false] %s1399_s25 }
  0xd5   : > { %s1401_s29 = scalar_lea.vmem %s1400_s25, 256  ;;  %p1402_p6 = scmp.lt.s32.totalorder %s408_s3, %s1400_s25 }
  0xd6   : > { %p1397_p1 = pnand %p1395_p12, %p2029_p0  ;;  %p1403_p8 = scmp.lt.s32.totalorder %s1401_s29, %s1394_s14 }
  0xd8   : > { %p1398_p4 = pneg %p1397_p1  ;;  %p1404_p10 = por %p1403_p8, %p1402_p6 }
  0xda   : > { %p1405_p7 = pnand %p1404_p10, %p1398_p4 }
  0xdc   : > { %1408 = shalt.err (!%p1405_p7)
}
  0xdd   : > { %p2032_p13 = scmp.ne.s32.totalorder %s2017_s19, 0  ;;  %p2033_p2 = scmp.ne.s32.totalorder %s2009_s17, 0 }
  0xde   : > { %s1856_s21 = sand.u32 (!%p2033_p2), 1, %s1479_s10   ;;  %p2034_p0 = scmp.ne.s32.totalorder (!%p2033_p2), %s2006_s15, 0 }
  0xdf   : > { %1153 = dma.hbm_to_vmem [thread:$0]  (!%p2032_p13), %s1814_s20, 128, %s408_s3, %s1723_s9  }
  0xe0   : > { %423 = sbr.rel (%p2033_p2) target bundleno = 508 (0x1fc), region = 56  ;;  %s1859_s27 = sshll.u32 (!%p2033_p2), %s1856_s21, 3 }
  0xe1   : > { %s426_s18 = scalar_lea.sflag (!%p2033_p2), [#allocation3], %s1856_s21  ;;  %s429_s16 = scalar_lea.vmem (!%p2033_p2), [#allocation2], %s1859_s27 }
  0xe7   : > { %1454 = dma.done.wait (%p2034_p0), %s426_s18, 128  }
  0xe8   : > { %1456 = vsyncadd (%p2034_p0), %s426_s18, 4294967168  ;;  %s434_s9 = sand.u32 1, %s1573_s13   ;;  %s438_s19 = scalar_lea.vmem [#allocation5], %s1859_s27 }
  0xe9   : > { %s435_s17 = scalar_lea.sflag [#allocation6], %s434_s9 }
  0xea   : > { %1458 = dma.done.wait (%p2034_p0), %s435_s17, 256  }
  0xeb   : > { %1460 = vsyncadd (%p2034_p0), %s435_s17, 4294967040  ;;  %s447_s20 = scalar_lea.vmem [#allocation7], %s1859_s27  ;;  %s453_s28 = scalar_lea.sflag [#allocation9], %s434_s9 }
  0xec   : > { %s456_s30 = scalar_lea.vmem [#allocation8], %s1859_s27 }
  0xed   : > { %1462 = dma.done.wait (%p2034_p0), %s453_s28, 256  }
  0xee   : > { %1464 = vsyncadd (%p2034_p0), %s453_s28, 4294967040  ;;  %s465_s0 = scalar_lea.vmem [#allocation10], %s1859_s27  ;;  %p2035_p10 = scmp.eq.s32.totalorder %s1573_s13, 0 }
  0xf0   : > { %1466 = dma.done.wait (%p2035_p10), [#allocation12], 4096   ;;  %p2036_p3 = pmov %p2035_p10 }
  0xf1   : > { %v1498_v0 = vmov 0.0|0.0   ;;  %vm1499_vm0 = vmmov 0   ;;  %v1500_v1 = vmov 0.0   ;;  %v562_v2 = vld [vmem:[#allocation13] sm:$0xff]  ;;  %v563_v3 = vld [vmem:[#allocation13 + $0x8] sm:$0xff]  ;;  %v564_v7 = vld [vmem:[#allocation13 + $0x10] sm:$0xff] }
  0xf2   : > { %1468 = vsyncadd (%p2036_p3), [#allocation12], 4294963200  ;;  %1063 = vmatprep.subr.bf16.mxu0 %v1498_v0  ;;  %1087 = vmatprep.subr.bf16.mxu1 %v1498_v0  ;;  %v546_v4 = vld [vmem:[#allocation11] sm:$0xff]  ;;  %v1064_v5 = vpack.c.bf16 %v563_v3, %v562_v2  ;;  %v547_v6 = vld [vmem:[#allocation11 + $0x8] sm:$0xff]  ;;  %p532_p9 = scmp.lt.s32.totalorder %s1573_s13, 1  ;;  %s2037_s8 = sld [smem:[#allocation29_spill]] }
  0xf3   : > { %1025 = vmatprep.mubr.msk.f32.mxu0 %vm1499_vm0, %v1500_v1  ;;  %1060 = vmatprep.mubr.msk.f32.mxu1 %vm1499_vm0, %v1500_v1  ;;  %v565_v8 = vld [vmem:[#allocation13 + $0x18] sm:$0xff]  ;;  %v1088_v9 = vpack.c.bf16 %v547_v6, %v546_v4  ;;  %v548_v10 = vld [vmem:[#allocation11 + $0x10] sm:$0xff]  ;;  %v566_v14 = vld [vmem:[#allocation13 + $0x20] sm:$0xff]  ;;  %s2038_s14 = sld [smem:[#allocation24_spill]]  ;;  %s956_s26 = sshll.u32 %s1573_s13, 7 }
  0xf4   : > { %v549_v11 = vld [vmem:[#allocation11 + $0x18] sm:$0xff]  ;;  %1065 = vmatpush3.bf16.msra.mxu0 %v1064_v5  ;;  %v1067_v12 = vpack.c.bf16 %v565_v8, %v564_v7  ;;  %v567_v15 = vld [vmem:[#allocation13 + $0x28] sm:$0xff]  ;;  %v550_v16 = vld [vmem:[#allocation11 + $0x20] sm:$0xff]  ;;  %s533_s15 = scalar_select %p532_p9, %s1573_s13, 1 }
  0xf5   : > { %1089 = vmatpush3.bf16.msra.mxu1 %v1088_v9  ;;  %1066 = vmatprep.subr.bf16.mxu0 %v1498_v0  ;;  %v1091_v13 = vpack.c.bf16 %v549_v11, %v548_v10  ;;  %v551_v17 = vld [vmem:[#allocation11 + $0x28] sm:$0xff]  ;;  %v1070_v18 = vpack.c.bf16 %v567_v15, %v566_v14  ;;  %v568_v20 = vld [vmem:[#allocation13 + $0x30] sm:$0xff]  ;;  %v569_v21 = vld [vmem:[#allocation13 + $0x38] sm:$0xff]  ;;  %s531_s25 = scalar_lea.vmem [#allocation14], %s1859_s27  ;;  %s2039_s9 = sld [smem:[#allocation30_spill]] }
  0xf6   : > { %1090 = vmatprep.subr.bf16.mxu1 %v1498_v0  ;;  %v1094_v19 = vpack.c.bf16 %v551_v17, %v550_v16  ;;  %v552_v22 = vld [vmem:[#allocation11 + $0x30] sm:$0xff]  ;;  %v553_v23 = vld [vmem:[#allocation11 + $0x38] sm:$0xff]  ;;  %v1073_v24 = vpack.c.bf16 %v569_v21, %v568_v20  ;;  %v570_v26 = vld [vmem:[#allocation13 + $0x40] sm:$0xff]  ;;  %s953_s3 = sshll.u32 %s533_s15, 3  ;;  %s742_s29 = sshll.u32 %s531_s25, 4  ;;  %s1925_s29 = int_to_ptr.vmem [resolvable:$true] %s742_s29 }
  0xf7   : > { %v1097_v25 = vpack.c.bf16 %v553_v23, %v552_v22  ;;  %v571_v27 = vld [vmem:[#allocation13 + $0x48] sm:$0xff]  ;;  %v554_v28 = vld [vmem:[#allocation11 + $0x40] sm:$0xff]  ;;  %v572_v32 = vld [vmem:[#allocation13 + $0x50] sm:$0xff]  ;;  %s535_s24 = scalar_lea.vmem %s1972_s5, %s953_s3  ;;  %s1501_s13 = smov [#allocation14]  }
  0xf8   : > { %1068 = vmatpush3.bf16.msra.mxu0 %v1067_v12  ;;  %v555_v29 = vld [vmem:[#allocation11 + $0x48] sm:$0xff]  ;;  %v1076_v30 = vpack.c.bf16 %v571_v27, %v570_v26  ;;  %v573_v33 = vld [vmem:[#allocation13 + $0x58] sm:$0xff]  ;;  %v556_v34 = vld [vmem:[#allocation11 + $0x50] sm:$0xff]  ;;  %s1413_s27 = sshll.u32 %s1501_s13, 4  ;;  %s1414_s27 = int_to_ptr.vmem [resolvable:$false] %s1413_s27 }
  0xf9   : > { %1092 = vmatpush3.bf16.msra.mxu1 %v1091_v13  ;;  %1069 = vmatprep.subr.bf16.mxu0 %v1498_v0  ;;  %v1100_v31 = vpack.c.bf16 %v555_v29, %v554_v28  ;;  %v557_v35 = vld [vmem:[#allocation11 + $0x58] sm:$0xff]  ;;  %v1079_v36 = vpack.c.bf16 %v573_v33, %v572_v32  ;;  %v574_v38 = vld [vmem:[#allocation13 + $0x60] sm:$0xff]  ;;  %v575_v39 = vld [vmem:[#allocation13 + $0x68] sm:$0xff]  ;;  %p2040_p5 = scmp.ne.s32.totalorder %s2038_s14, 0  ;;  %s1415_s28 = scalar_lea.vmem %s1414_s27, 256 }
  0xfa   : > { %1093 = vmatprep.subr.bf16.mxu1 %v1498_v0  ;;  %v1103_v37 = vpack.c.bf16 %v557_v35, %v556_v34  ;;  %v558_v40 = vld [vmem:[#allocation11 + $0x60] sm:$0xff]  ;;  %v559_v41 = vld [vmem:[#allocation11 + $0x68] sm:$0xff]  ;;  %v1082_v42 = vpack.c.bf16 %v575_v39, %v574_v38  ;;  %v576_v43 = vld [vmem:[#allocation13 + $0x70] sm:$0xff]  ;;  %p1416_p4 = scmp.lt.s32.totalorder %s1925_s29, %s1414_s27 }
  0xfb   : > { %v541_v44 = vld [vmem:[%s456_s30] sm:$0xff]  ;;  %v542_v45 = vld [vmem:[%s465_s0] sm:$0xff]  ;;  %v1106_v46 = vpack.c.bf16 %v559_v41, %v558_v40  ;;  %s1923_s17 = scalar_lea.hbm %s2039_s9, %s956_s26 }
  0xfc   : > { %1071 = vmatpush3.bf16.msra.mxu0 %v1070_v18  ;;  %v577_v47 = vld [vmem:[#allocation13 + $0x78] sm:$0xff]  ;;  %v537_v49 = vld [vmem:[%s438_s19] sm:$0xff]  ;;  %v560_v50 = vld [vmem:[#allocation11 + $0x70] sm:$0xff]  ;;  %v543_v52 = vadd.f32 %v542_v45, %v541_v44  ;;  %s729_s19 = scalar_lea.sflag [#allocation4], %s1856_s21 }
  0xfd   : > { %1095 = vmatpush3.bf16.msra.mxu1 %v1094_v19  ;;  %1072 = vmatprep.subr.bf16.mxu0 %v1498_v0  ;;  %v536_v48 = vld [vmem:[%s429_s16] sm:$0xff]  ;;  %v1085_v53 = vpack.c.bf16 %v577_v47, %v576_v43 }
  0xfe   : > { %1096 = vmatprep.subr.bf16.mxu1 %v1498_v0  ;;  %v561_v51 = vld [vmem:[#allocation11 + $0x78] sm:$0xff]  ;;  %v544_v54 = vld [vmem:[%s535_s24] sm:$0xff]  ;;  %v538_v55 = vadd.f32 %v537_v49, %v536_v48 }
  0xff   : > { %v1109_v56 = vpack.c.bf16 %v561_v51, %v560_v50  ;;  %v539_v57 = vld [vmem:[%s447_s20] sm:$0xff]  ;;  %v545_v58 = vadd.f32 %v544_v54, %v543_v52  ;;  %s1409_s20 = scalar_lea.vmem %s1925_s29, 128 }
 0x100   : > { %1074 = vmatpush3.bf16.msra.mxu0 %v1073_v24  ;;  %v540_v59 = vadd.f32 %v539_v57, %v538_v55  ;;  %v954_v62 = vld [vmem:[%s2037_s8] ss:$0 sm:$0xff]  ;;  %p1410_p11 = scmp.ne.s32.totalorder %s1925_s29, %s1409_s20  ;;  %p1417_p6 = scmp.lt.s32.totalorder %s1415_s28, %s1409_s20 }
 0x101   : > { %1098 = vmatpush3.bf16.msra.mxu1 %v1097_v25  ;;  %1075 = vmatprep.subr.bf16.mxu0 %v1498_v0 }
 0x102   : > { %1099 = vmatprep.subr.bf16.mxu1 %v1498_v0  ;;  %p1411_p12 = pnand %p1410_p11, %p2040_p5  ;;  %p1418_p8 = por %p1417_p6, %p1416_p4 }
 0x104   : > { %1077 = vmatpush3.bf16.msra.mxu0 %v1076_v30  ;;  %p1412_p1 = pneg %p1411_p12 }
 0x105   : > { %1101 = vmatpush3.bf16.msra.mxu1 %v1100_v31  ;;  %1078 = vmatprep.subr.bf16.mxu0 %v1498_v0 }
 0x106   : > { %1102 = vmatprep.subr.bf16.mxu1 %v1498_v0  ;;  %p1419_p7 = pnand %p1418_p8, %p1412_p1 }
 0x108   : > { %1080 = vmatpush3.bf16.msra.mxu0 %v1079_v36 }
 0x109   : > { %1104 = vmatpush3.bf16.msra.mxu1 %v1103_v37  ;;  %1081 = vmatprep.subr.bf16.mxu0 %v1498_v0 }
 0x10a   : > { %1105 = vmatprep.subr.bf16.mxu1 %v1498_v0 }
 0x10c   : > { %1083 = vmatpush3.bf16.msra.mxu0 %v1082_v42 }
 0x10d   : > { %1107 = vmatpush3.bf16.msra.mxu1 %v1106_v46  ;;  %1084 = vmatprep.subr.bf16.mxu0 %v1498_v0 }
 0x10e   : > { %1108 = vmatprep.subr.bf16.mxu1 %v1498_v0 }
 0x110   : > { %1086 = vmatpush3.bf16.msra.mxu0 %v1085_v53 }
 0x111   : > { %1110 = vmatpush3.bf16.msra.mxu1 %v1109_v56 }
 0x113   : > { %1026 = vmatmul.mubr.f32.vlgmr.msra.gmra.mrb[0].mxu0 %v545_v58 }
 0x114   : > { %1061 = vmatmul.mubr.f32.vlgmr.msra.gmra.mrb[0].mxu1 %v540_v59 }
 0x1e6   : > { %v644_v60 = vpop.f32.mrb[0].mxu0 }
 0x1e7   : > { %v714_v61 = vpop.f32.mrb[0].mxu1  ;;  %v1027_v63 = vpop.f32.mrb[1].mxu0 }
 0x1e8   : > { %v715_v1 = vadd.f32 %v714_v61, %v644_v60  ;;  %v1062_v2 = vpop.f32.mrb[1].mxu1 }
 0x1ea   : > { %v725_v0 = vadd.f32 %v954_v62, %v715_v1 }
 0x1ec   : > { %v726_v3 = vmax.f32 %v725_v0, 0.0 }
 0x1ee   : > { %727 = vst [vmem:[%s531_s25] sm:$0xff] %v726_v3 }
 0x1ef   : > { %1422 = shalt.err (!%p1419_p7)
}
 0x1f0   : > { %s1423_s21 = scalar_lea.hbm %s1923_s17, 128  ;;  %s1427_s15 = scalar_lea.hbm %s2039_s9, 256 }
 0x1f1   : > { %p1424_p13 = scmp.ne.s32.totalorder %s1923_s17, %s1423_s21  ;;  %p1428_p10 = scmp.lt.u32.totalorder %s1923_s17, %s2039_s9 }
 0x1f2   : > { %p1429_p3 = scmp.lt.u32.totalorder %s1427_s15, %s1423_s21  ;;  %p1431_p11 = scmp.lt.u32.totalorder %s1423_s21, %s1923_s17 }
 0x1f3   : > { %p1425_p2 = pnand %p1424_p13, %p2040_p5 }
 0x1f4   : > { %p1430_p9 = por %p1429_p3, %p1428_p10 }
 0x1f5   : > { %p1426_p0 = pneg %p1425_p2 }
 0x1f6   : > { %p1432_p12 = por %p1431_p11, %p1430_p9 }
 0x1f8   : > { %p1433_p1 = pnand %p1432_p12, %p1426_p0 }
 0x1fa   : > { %1436 = shalt.err (!%p1433_p1)
}
 0x1fb   : > { %1129 = dma.vmem_to_hbm [thread:$0]  (%p2040_p5), %s1925_s29, 128, %s1923_s17, %s729_s19  }
 0x1fc PF: > { %s2041_s6 = sld [smem:[#allocation20_spill]]  ;;  %s2042_s24 = sld [smem:[#allocation21_spill]] }
 0x1fd   : > { %p2044_p6 = scmp.ge.s32.totalorder %s1487_s12, 2 }
 0x202   : > { %s754_s1 = sand.u32 1, %s2041_s6   ;;  %p2043_p4 = scmp.ne.s32.totalorder %s2042_s24, 0 }
 0x203   : > { %s755_s22 = scalar_lea.sflag [#allocation4], %s754_s1 }
 0x204   : > { %p1155_p8 = pnand %p2044_p6, %p2043_p4 }
 0x206   : > { %1470 = dma.done.wait (!%p1155_p8), %s755_s22, 128  }
 0x207   : > { %1472 = vsyncadd (!%p1155_p8), %s755_s22, 4294967168  ;;  %s2045_s12 = sld [smem:[#allocation22_spill]]  ;;  %s2046_s8 = sld [smem:[#allocation23_spill]] }
 0x208   : > { %s2047_s30 = smov %s1479_s10  ;;  %s2048_s10 = smov %s1483_s11 }
 0x20d   : > { %p29_p7 = scmp.ge.s32.totalorder %s2045_s12, 4   ;;  %s2049_s11 = smov %s2046_s8 }
 0x20f   :  { %31 = sbr.rel (!%p29_p7) target bundleno = 17 (0x11), region = 160 }
 0x216   :  { %760 = vsyncpa [#allocation3], 1 }
 0x217   :  { %762 = vsyncpa [#allocation3 + $0x1], 1 }
 0x218   :  { %763 = vsyncpa [#allocation6], 1 }
 0x219   :  { %765 = vsyncpa [#allocation6 + $0x1], 1 }
 0x21a   :  { %766 = vsyncpa [#allocation9], 1 }
 0x21b   :  { %768 = vsyncpa [#allocation9 + $0x1], 1 }
 0x21c   :  { %769 = vsyncpa [#allocation12], 1 }
 0x21d   :  { %770 = vsyncpa [#allocation4], 1 }
 0x21e   :  { %772 = vsyncpa [#allocation4 + $0x1], 1 }

// kernel: tpu_custom_call.1
= control target key start
LH: loop header
LB: loop body
LE: loop exit
PB: predicated region body
PF: predicated region fallthrough
CT: control target
= control target key end

     0   :  { %s1967_s0 = inlined_call_operand.hbm [shape: f32[16,128], index: 0, kind: input, shape index: {}]   ;;  %s1968_s1 = inlined_call_operand.hbm [shape: f32[16,128], index: 1, kind: input, shape index: {}]   ;;  %s1969_s2 = inlined_call_operand.hbm [shape: f32[16,128], index: 2, kind: input, shape index: {}]   ;;  %s1970_s3 = inlined_call_operand.hbm [shape: f32[16,128], index: 3, kind: input, shape index: {}]   ;;  %s1971_s4 = inlined_call_operand.hbm [shape: f32[16,128], index: 4, kind: input, shape index: {}]   ;;  %s1972_s5 = inlined_call_operand.vmem [shape: f32[16,128], index: 5, kind: input, shape index: {}]   ;;  %s1973_s6 = inlined_call_operand.hbm [shape: f32[128,128], index: 6, kind: input, shape index: {}]   ;;  %s1974_s7 = inlined_call_operand.hbm [shape: f32[128,128], index: 7, kind: input, shape index: {}]   ;;  %s1975_s8 = inlined_call_operand.vmem [shape: f32[1,128], index: 8, kind: input, shape index: {}]   ;;  %s1976_s9 = inlined_call_operand.hbm [shape: f32[16,128], index: 9, kind: output, shape index: {}]  }
   0x1   :  { %1999 = sst [smem:[#allocation25_spill]] %s1967_s0 }
   0x2   :  { %2000 = sst [smem:[#allocation26_spill]] %s1968_s1 }
   0x3   :  { %2001 = sst [smem:[#allocation27_spill]] %s1970_s3 }
   0x4   :  { %2002 = sst [smem:[#allocation28_spill]] %s1973_s6 }
   0x5   :  { %2003 = sst [smem:[#allocation29_spill]] %s1975_s8 }
   0x6   :  { %2004 = sst [smem:[#allocation30_spill]] %s1976_s9 }
   0x7   :  { %14 = vsyncpa [#allocation3], 0 }
   0x8   :  { %16 = vsyncpa [#allocation3 + $0x1], 0 }
   0x9   :  { %17 = vsyncpa [#allocation6], 0 }
   0xa   :  { %19 = vsyncpa [#allocation6 + $0x1], 0 }
   0xb   :  { %20 = vsyncpa [#allocation9], 0 }
   0xc   :  { %22 = vsyncpa [#allocation9 + $0x1], 0 }
   0xd   :  { %23 = vsyncpa [#allocation12], 0 }
   0xe   :  { %24 = vsyncpa [#allocation4], 0 }
   0xf   :  { %26 = vsyncpa [#allocation4 + $0x1], 0  ;;  %s1552_s30 = smov 0   ;;  %s1554_s10 = smov 0  }
  0x10   :  { %s1556_s11 = smov 0   ;;  %s1558_s12 = smov 0  }
  0x11 LB: > { %2005 = sst [smem:[#allocation20_spill]] %s1475_s30  ;;  %s1573_s13 = sadd.s32 4294967295, %s1487_s12   ;;  %s1487_s12 = sphi %s1558_s12, %s2045_s12   ;;  %s1483_s11 = sphi %s1556_s11, %s2049_s11   ;;  %s1479_s10 = sphi %s1554_s10, %s2048_s10   ;;  %s1475_s30 = sphi %s1552_s30, %s2047_s30  }
  0x12   : > { %s929_s14 = sadd.s32 4294967294, %s1487_s12   ;;  %p52_p0 = scmp.ne.s32.totalorder %s1479_s10, %s1475_s30 }
  0x13   : > { %p1977_p1 = scmp.eq.s32.totalorder %s1573_s13, 0  ;;  %p275_p3 = scmp.eq.s32.totalorder %s929_s14, 1 }
  0x14   : > { %p930_p5 = scmp.ge.s32.totalorder %s1487_s12, 1  ;;  %p282_p7 = scmp.lt.s32.totalorder %s1487_s12, 3 }
  0x15   : > { %p1582_p4 = por %p1977_p1, %p52_p0  ;;  %p1587_p6 = por %p275_p3, %p52_p0 }
  0x16   : > { %p1592_p8 = pnand %p930_p5, %p282_p7  ;;  %s1489_s18 = smov [#allocation11]  }
  0x17   : > { %s2006_s15 = scalar_select %p1582_p4, 1, 0 }
  0x18   : > { %s2007_s16 = scalar_select %p1587_p6, 1, 0 }
  0x19   : > { %s2009_s17 = scalar_select %p1592_p8, 1, 0 }
  0x1a   : > { %2008 = sst [smem:[#allocation21_spill]] %s2007_s16  ;;  %s294_s19 = sshll.u32 %s1489_s18, 4  ;;  %s1596_s19 = int_to_ptr.vmem [resolvable:$true] %s294_s19 }
  0x1b   : > { %p1131_p9 = pneg %p1592_p8  ;;  %s1608_s21 = sadd.s32 1, %s1487_s12  }
  0x1c   : > { %2011 = sst [smem:[#allocation22_spill]] %s1608_s21  ;;  %s39_s22 = sadd.s32 1, %s1483_s11 }
  0x1d   : > { %p1603_p11 = pnand %p1131_p9, %p1977_p1  ;;  %s36_s23 = ssub.s32 %s1487_s12, %s1608_s21 }
  0x1e   : > { %s2012_s6 = sld [smem:[#allocation28_spill]] }
  0x1f   : > { %s2010_s20 = scalar_select %p1603_p11, 1, 0 }
  0x20   : > { %p1985_p13 = pneg %p1603_p11 }
  0x24   : > { %s1203_s26 = scalar_lea.hbm %s2012_s6, 2048 }
  0x25   : > { %p1204_p12 = scmp.ne.s32.totalorder %s2012_s6, %s1203_s26  ;;  %p1210_p5 = scmp.lt.u32.totalorder %s1203_s26, %s2012_s6 }
  0x27   : > { %p1206_p0 = pnand %p1985_p13, %p1204_p12 }
  0x29   : > { %p1207_p3 = pneg %p1206_p0 }
  0x2b   : > { %p1212_p7 = pnand %p1210_p5, %p1207_p3 }
  0x2d   : > { %1215 = shalt.err (!%p1212_p7)
}
  0x2e   : > { %s1216_s18 = scalar_lea.vmem %s1596_s19, 2048  ;;  %p1224_p2 = scmp.lt.s32.totalorder %s1596_s19, %s1596_s19 }
  0x2f   : > { %p1217_p9 = scmp.ne.s32.totalorder %s1596_s19, %s1216_s18  ;;  %p1225_p12 = scmp.lt.s32.totalorder %s1216_s18, %s1216_s18 }
  0x31   : > { %p1219_p10 = pnand %p1217_p9, %p1985_p13  ;;  %p1226_p0 = por %p1225_p12, %p1224_p2 }
  0x33   : > { %p1220_p1 = pneg %p1219_p10 }
  0x35   : > { %p1227_p6 = pnand %p1226_p0, %p1220_p1 }
  0x37   : > { %1230 = shalt.err (!%p1227_p6)
}
  0x38   : > { %s1978_s24 = smov 128   ;;  %s1979_s25 = smov 8  }
  0x39   : > { %1134 = dma.hbm_to_vmem [thread:$0]  (!%p1603_p11), %s2012_s6, 2048, %s1596_s19, [#allocation12], %s1978_s24, %s1978_s24, %s1979_s25  }
  0x3a   : > { %p37_p1 = scmp.eq.s32.totalorder %s36_s23, 0  ;;  %p46_p2 = scmp.ne.s32.totalorder %s1483_s11, %s1479_s10 }
  0x3b   : > { %p47_p6 = scmp.eq.s32.totalorder %s1487_s12, 0  ;;  %p1160_p10 = scmp.lt.s32.totalorder %s1487_s12, 2 }
  0x3c   : > { %s1648_s28 = scalar_select %p37_p1, %s1483_s11, %s39_s22  }
  0x3d   : > { %p48_p3 = por %p47_p6, %p46_p2  ;;  %p2014_p5 = scmp.eq.s32.totalorder %s1573_s13, 1 }
  0x3e   : > { %2013 = sst [smem:[#allocation23_spill]] %s1648_s28  ;;  %s1980_s14 = sand.u32 1, %s1483_s11  }
  0x3f   : > { %p1652_p7 = por %p2014_p5, %p46_p2  ;;  %s1658_s18 = sshll.u32 %s1487_s12, 7 }
  0x40   : > { %s1662_s26 = sshll.u32 %s1980_s14, 3  ;;  %p1664_p9 = pnand %p1160_p10, %p48_p3 }
  0x41   : > { %s2015_s29 = scalar_select %p1652_p7, 1, 0 }
  0x42   : > { %s2017_s19 = scalar_select %p1664_p9, 1, 0 }
  0x43   : > { %2016 = sst [smem:[#allocation24_spill]] %s2015_s29  ;;  %s1987_s22 = sand.u32 1, %s1487_s12  }
  0x44   : > { %s2018_s1 = sld [smem:[#allocation26_spill]]  ;;  %s346_s25 = scalar_lea.vmem [#allocation5], %s1662_s26 }
  0x45   : > { %s353_s6 = sshll.u32 %s346_s25, 4  ;;  %s1680_s14 = scalar_lea.sflag [#allocation6], %s1987_s22  ;;  %s1676_s6 = int_to_ptr.vmem [resolvable:$true] %s353_s6 }
  0x46   : > { %p1686_p0 = pneg %p1664_p9 }
  0x48   : > { %s2019_s21 = scalar_select %p1686_p0, 1, 0 }
  0x4a   : > { %s1673_s24 = scalar_lea.hbm %s2018_s1, %s1658_s18  ;;  %s1236_s25 = scalar_lea.hbm %s2018_s1, 256 }
  0x4b   : > { %s1231_s28 = scalar_lea.hbm %s1673_s24, 128  ;;  %p1237_p6 = scmp.lt.u32.totalorder %s1673_s24, %s2018_s1 }
  0x4c   : > { %p1232_p12 = scmp.ne.s32.totalorder %s1673_s24, %s1231_s28  ;;  %p1238_p10 = scmp.lt.u32.totalorder %s1236_s25, %s1231_s28 }
  0x4d   : > { %p1240_p5 = scmp.lt.u32.totalorder %s1231_s28, %s1673_s24 }
  0x4e   : > { %p1234_p1 = pnand %p1686_p0, %p1232_p12  ;;  %p1239_p3 = por %p1238_p10, %p1237_p6 }
  0x50   : > { %p1235_p2 = pneg %p1234_p1  ;;  %p1241_p13 = por %p1240_p5, %p1239_p3 }
  0x52   : > { %p1242_p7 = pnand %p1241_p13, %p1235_p2 }
  0x54   : > { %1245 = shalt.err (!%p1242_p7)
}
  0x55   : > { %s1246_s22 = scalar_lea.vmem %s1676_s6, 128  ;;  %s1492_s23 = smov [#allocation5]  }
  0x56   : > { %p1247_p12 = scmp.ne.s32.totalorder %s1676_s6, %s1246_s22  ;;  %s1251_s27 = sshll.u32 %s1492_s23, 4  ;;  %s1252_s27 = int_to_ptr.vmem [resolvable:$false] %s1251_s27 }
  0x57   : > { %s1253_s30 = scalar_lea.vmem %s1252_s27, 256  ;;  %p1254_p8 = scmp.lt.s32.totalorder %s1676_s6, %s1252_s27 }
  0x58   : > { %p1249_p1 = pnand %p1247_p12, %p1686_p0  ;;  %p1255_p11 = scmp.lt.s32.totalorder %s1253_s30, %s1246_s22 }
  0x5a   : > { %p1250_p4 = pneg %p1249_p1  ;;  %p1256_p6 = por %p1255_p11, %p1254_p8 }
  0x5c   : > { %p1257_p10 = pnand %p1256_p6, %p1250_p4 }
  0x5e   : > { %1260 = shalt.err (!%p1257_p10)
}
  0x5f   : > { %1144 = dma.hbm_to_vmem [thread:$0]  (!%p1664_p9), %s1673_s24, 128, %s1676_s6, %s1680_s14  }
  0x60   : > { %s2020_s3 = sld [smem:[#allocation27_spill]]  ;;  %s382_s22 = scalar_lea.vmem [#allocation8], %s1662_s26 }
  0x61   : > { %s389_s23 = sshll.u32 %s382_s22, 4  ;;  %s1493_s27 = smov [#allocation13]   ;;  %s1717_s23 = int_to_ptr.vmem [resolvable:$true] %s389_s23 }
  0x62   : > { %s1719_s30 = sshll.u32 %s1493_s27, 4  ;;  %s2021_s1 = sand.u32 1, %s1487_s12   ;;  %s308_s30 = int_to_ptr.vmem [resolvable:$true] %s1719_s30 }
  0x63   : > { %s1723_s9 = scalar_lea.sflag [#allocation9], %s2021_s1 }
  0x66   : > { %s1714_s25 = scalar_lea.hbm %s2020_s3, %s1658_s18  ;;  %s1266_s28 = scalar_lea.hbm %s2020_s3, 256 }
  0x67   : > { %s1261_s6 = scalar_lea.hbm %s1714_s25, 128  ;;  %p1267_p13 = scmp.lt.u32.totalorder %s1714_s25, %s2020_s3 }
  0x68   : > { %p1262_p4 = scmp.ne.s32.totalorder %s1714_s25, %s1261_s6  ;;  %p1268_p7 = scmp.lt.u32.totalorder %s1266_s28, %s1261_s6 }
  0x69   : > { %p1270_p3 = scmp.lt.u32.totalorder %s1261_s6, %s1714_s25 }
  0x6a   : > { %p1264_p8 = pnand %p1262_p4, %p1686_p0  ;;  %p1269_p2 = por %p1268_p7, %p1267_p13 }
  0x6c   : > { %p1265_p11 = pneg %p1264_p8  ;;  %p1271_p5 = por %p1270_p3, %p1269_p2 }
  0x6e   : > { %p1272_p12 = pnand %p1271_p5, %p1265_p11 }
  0x70   : > { %1275 = shalt.err (!%p1272_p12)
}
  0x71   : > { %s1276_s1 = scalar_lea.vmem %s1717_s23, 128  ;;  %s1494_s22 = smov [#allocation8]  }
  0x72   : > { %p1277_p1 = scmp.ne.s32.totalorder %s1717_s23, %s1276_s1  ;;  %s1281_s27 = sshll.u32 %s1494_s22, 4  ;;  %s1282_s27 = int_to_ptr.vmem [resolvable:$false] %s1281_s27 }
  0x73   : > { %s1283_s8 = scalar_lea.vmem %s1282_s27, 256  ;;  %p1284_p4 = scmp.lt.s32.totalorder %s1717_s23, %s1282_s27 }
  0x74   : > { %p1279_p6 = pnand %p1277_p1, %p1686_p0  ;;  %p1285_p8 = scmp.lt.s32.totalorder %s1283_s8, %s1276_s1 }
  0x76   : > { %p1280_p10 = pneg %p1279_p6  ;;  %p1286_p13 = por %p1285_p8, %p1284_p4 }
  0x78   : > { %p1287_p7 = pnand %p1286_p13, %p1280_p10 }
  0x7a   : > { %1290 = shalt.err (!%p1287_p7)
}
  0x7b   : > { %1150 = dma.hbm_to_vmem [thread:$0]  (!%p1664_p9), %s1714_s25, 128, %s1717_s23, %s1723_s9  }
  0x7c   : > { %s1291_s24 = scalar_lea.hbm %s1974_s7, 2048  ;;  %p2022_p2 = scmp.ne.s32.totalorder %s2010_s20, 0 }
  0x7d   : > { %p1292_p11 = scmp.ne.s32.totalorder %s1974_s7, %s1291_s24  ;;  %p1298_p1 = scmp.lt.u32.totalorder %s1291_s24, %s1974_s7 }
  0x7e   : > { %p2023_p3 = pneg %p2022_p2 }
  0x80   : > { %p1294_p5 = pnand %p1292_p11, %p2023_p3 }
  0x82   : > { %p1295_p12 = pneg %p1294_p5 }
  0x84   : > { %p1300_p6 = pnand %p1298_p1, %p1295_p12 }
  0x86   : > { %1303 = shalt.err (!%p1300_p6)
}
  0x87   : > { %s1304_s25 = scalar_lea.vmem %s308_s30, 2048  ;;  %p2024_p4 = pmov %p2023_p3 }
  0x88   : > { %p1305_p10 = scmp.ne.s32.totalorder %s308_s30, %s1304_s25  ;;  %p1312_p7 = scmp.lt.s32.totalorder %s308_s30, %s308_s30 }
  0x89   : > { %p1313_p9 = scmp.lt.s32.totalorder %s1304_s25, %s1304_s25 }
  0x8a   : > { %p1307_p8 = pnand %p1305_p10, %p2024_p4 }
  0x8b   : > { %p1314_p0 = por %p1313_p9, %p1312_p7 }
  0x8c   : > { %p1308_p13 = pneg %p1307_p8 }
  0x8e   : > { %p1315_p3 = pnand %p1314_p0, %p1308_p13 }
  0x90   : > { %1318 = shalt.err (!%p1315_p3)
}
  0x91   : > { %s2025_s23 = smov 8   ;;  %s2026_s27 = smov 128  }
  0x92   : > { %1137 = dma.hbm_to_vmem [thread:$0]  (!%p2022_p2), %s1974_s7, 2048, %s308_s30, [#allocation12], %s2026_s27, %s2026_s27, %s2025_s23  }
  0x93   : > { %s2027_s0 = sld [smem:[#allocation25_spill]]  ;;  %s328_s20 = scalar_lea.vmem [#allocation2], %s1662_s26 }
  0x94   : > { %s335_s28 = sshll.u32 %s328_s20, 4  ;;  %s1784_s25 = scalar_lea.hbm %s1969_s2, %s1658_s18  ;;  %s1778_s28 = int_to_ptr.vmem [resolvable:$true] %s335_s28 }
  0x95   : > { %s2028_s8 = sand.u32 1, %s1483_s11   ;;  %p2029_p0 = scmp.ne.s32.totalorder %s2019_s21, 0 }
  0x96   : > { %s325_s30 = scalar_lea.sflag [#allocation3], %s2028_s8 }
  0x99   : > { %s1775_s16 = scalar_lea.hbm %s2027_s0, %s1658_s18  ;;  %s1324_s6 = scalar_lea.hbm %s2027_s0, 256 }
  0x9a   : > { %s1319_s23 = scalar_lea.hbm %s1775_s16, 128  ;;  %p1325_p5 = scmp.lt.u32.totalorder %s1775_s16, %s2027_s0 }
  0x9b   : > { %p1320_p9 = scmp.ne.s32.totalorder %s1775_s16, %s1319_s23  ;;  %p1326_p12 = scmp.lt.u32.totalorder %s1324_s6, %s1319_s23 }
  0x9c   : > { %p1328_p6 = scmp.lt.u32.totalorder %s1319_s23, %s1775_s16 }
  0x9d   : > { %p1322_p11 = pnand %p1320_p9, %p2029_p0  ;;  %p1327_p1 = por %p1326_p12, %p1325_p5 }
  0x9f   : > { %p1323_p2 = pneg %p1322_p11  ;;  %p1329_p10 = por %p1328_p6, %p1327_p1 }
  0xa1   : > { %p1330_p4 = pnand %p1329_p10, %p1323_p2 }
  0xa3   : > { %1333 = shalt.err (!%p1330_p4)
}
  0xa4   : > { %s1334_s1 = scalar_lea.vmem %s1778_s28, 128  ;;  %s1495_s22 = smov [#allocation2]  }
  0xa5   : > { %p1335_p8 = scmp.ne.s32.totalorder %s1778_s28, %s1334_s1  ;;  %s1339_s8 = sshll.u32 %s1495_s22, 4  ;;  %s1340_s8 = int_to_ptr.vmem [resolvable:$false] %s1339_s8 }
  0xa6   : > { %s1341_s27 = scalar_lea.vmem %s1340_s8, 256  ;;  %p1342_p3 = scmp.lt.s32.totalorder %s1778_s28, %s1340_s8 }
  0xa7   : > { %p1337_p13 = pnand %p1335_p8, %p2029_p0  ;;  %p1343_p9 = scmp.lt.s32.totalorder %s1341_s27, %s1334_s1 }
  0xa9   : > { %p1338_p7 = pneg %p1337_p13  ;;  %p1344_p11 = por %p1343_p9, %p1342_p3 }
  0xab   : > { %p1345_p5 = pnand %p1344_p11, %p1338_p7 }
  0xad   : > { %1348 = shalt.err (!%p1345_p5)
}
  0xae   : > { %p2030_p2 = scmp.ne.s32.totalorder %s2017_s19, 0  ;;  %s364_s23 = scalar_lea.vmem [#allocation7], %s1662_s26 }
  0xaf   : > { %s371_s29 = sshll.u32 %s364_s23, 4  ;;  %s1814_s20 = scalar_lea.hbm %s1971_s4, %s1658_s18  ;;  %s372_s29 = int_to_ptr.vmem [resolvable:$true] %s371_s29 }
  0xb0   : > { %1141 = dma.hbm_to_vmem [thread:$0]  (!%p2030_p2), %s1775_s16, 128, %s1778_s28, %s325_s30  }
  0xb1   : > { %s1349_s1 = scalar_lea.hbm %s1784_s25, 128  ;;  %s1354_s27 = scalar_lea.hbm %s1969_s2, 256 }
  0xb2   : > { %p1350_p12 = scmp.ne.s32.totalorder %s1784_s25, %s1349_s1  ;;  %p1355_p10 = scmp.lt.u32.totalorder %s1784_s25, %s1969_s2 }
  0xb3   : > { %p1356_p4 = scmp.lt.u32.totalorder %s1354_s27, %s1349_s1  ;;  %p1358_p13 = scmp.lt.u32.totalorder %s1349_s1, %s1784_s25 }
  0xb4   : > { %p1352_p1 = pnand %p1350_p12, %p2029_p0 }
  0xb5   : > { %p1357_p8 = por %p1356_p4, %p1355_p10 }
  0xb6   : > { %p1353_p6 = pneg %p1352_p1 }
  0xb7   : > { %p1359_p7 = por %p1358_p13, %p1357_p8 }
  0xb9   : > { %p1360_p3 = pnand %p1359_p7, %p1353_p6 }
  0xbb   : > { %1363 = shalt.err (!%p1360_p3)
}
  0xbc   : > { %s1364_s18 = scalar_lea.vmem %s372_s29, 128  ;;  %s1496_s16 = smov [#allocation7]  }
  0xbd   : > { %p1365_p9 = scmp.ne.s32.totalorder %s372_s29, %s1364_s18  ;;  %s1369_s28 = sshll.u32 %s1496_s16, 4  ;;  %s1370_s28 = int_to_ptr.vmem [resolvable:$false] %s1369_s28 }
  0xbe   : > { %s1371_s30 = scalar_lea.vmem %s1370_s28, 256  ;;  %p1372_p12 = scmp.lt.s32.totalorder %s372_s29, %s1370_s28 }
  0xbf   : > { %p1367_p11 = pnand %p1365_p9, %p2029_p0  ;;  %p1373_p1 = scmp.lt.s32.totalorder %s1371_s30, %s1364_s18 }
  0xc1   : > { %p1368_p5 = pneg %p1367_p11  ;;  %p1374_p2 = por %p1373_p1, %p1372_p12 }
  0xc3   : > { %p1375_p4 = pnand %p1374_p2, %p1368_p5 }
  0xc5   : > { %1378 = shalt.err (!%p1375_p4)
}
  0xc6   : > { %p2031_p10 = scmp.ne.s32.totalorder %s2017_s19, 0  ;;  %s400_s0 = scalar_lea.vmem [#allocation10], %s1662_s26 }
  0xc7   : > { %s407_s3 = sshll.u32 %s400_s0, 4  ;;  %s1379_s23 = scalar_lea.hbm %s1814_s20, 128  ;;  %s408_s3 = int_to_ptr.vmem [resolvable:$true] %s407_s3 }
  0xc8   : > { %1147 = dma.hbm_to_vmem [thread:$0]  (!%p2031_p10), %s1784_s25, 128, %s372_s29, %s1680_s14  }
  0xc9   : > { %p1380_p6 = scmp.ne.s32.totalorder %s1814_s20, %s1379_s23  ;;  %s1384_s1 = scalar_lea.hbm %s1971_s4, 256 }
  0xca   : > { %p1385_p13 = scmp.lt.u32.totalorder %s1814_s20, %s1971_s4  ;;  %p1386_p7 = scmp.lt.u32.totalorder %s1384_s1, %s1379_s23 }
  0xcb   : > { %p1382_p8 = pnand %p1380_p6, %p2029_p0  ;;  %p1388_p9 = scmp.lt.u32.totalorder %s1379_s23, %s1814_s20 }
  0xcc   : > { %p1387_p3 = por %p1386_p7, %p1385_p13 }
  0xcd   : > { %p1383_p2 = pneg %p1382_p8 }
  0xce   : > { %p1389_p11 = por %p1388_p9, %p1387_p3 }
  0xd0   : > { %p1390_p5 = pnand %p1389_p11, %p1383_p2 }
  0xd2   : > { %1393 = shalt.err (!%p1390_p5)
}
  0xd3   : > { %s1394_s14 = scalar_lea.vmem %s408_s3, 128  ;;  %s1497_s26 = smov [#allocation10]  }
  0xd4   : > { %p1395_p12 = scmp.ne.s32.totalorder %s408_s3, %s1394_s14  ;;  %s1399_s25 = sshll.u32 %s1497_s26, 4  ;;  %s1400_s25 = int_to_ptr.vmem [resolvable:$false] %s1399_s25 }
  0xd5   : > { %s1401_s29 = scalar_lea.vmem %s1400_s25, 256  ;;  %p1402_p6 = scmp.lt.s32.totalorder %s408_s3, %s1400_s25 }
  0xd6   : > { %p1397_p1 = pnand %p1395_p12, %p2029_p0  ;;  %p1403_p8 = scmp.lt.s32.totalorder %s1401_s29, %s1394_s14 }
  0xd8   : > { %p1398_p4 = pneg %p1397_p1  ;;  %p1404_p10 = por %p1403_p8, %p1402_p6 }
  0xda   : > { %p1405_p7 = pnand %p1404_p10, %p1398_p4 }
  0xdc   : > { %1408 = shalt.err (!%p1405_p7)
}
  0xdd   : > { %p2032_p13 = scmp.ne.s32.totalorder %s2017_s19, 0  ;;  %p2033_p2 = scmp.ne.s32.totalorder %s2009_s17, 0 }
  0xde   : > { %s1856_s21 = sand.u32 (!%p2033_p2), 1, %s1479_s10   ;;  %p2034_p0 = scmp.ne.s32.totalorder (!%p2033_p2), %s2006_s15, 0 }
  0xdf   : > { %1153 = dma.hbm_to_vmem [thread:$0]  (!%p2032_p13), %s1814_s20, 128, %s408_s3, %s1723_s9  }
  0xe0   : > { %423 = sbr.rel (%p2033_p2) target bundleno = 508 (0x1fc), region = 56  ;;  %s1859_s27 = sshll.u32 (!%p2033_p2), %s1856_s21, 3 }
  0xe1   : > { %s426_s18 = scalar_lea.sflag (!%p2033_p2), [#allocation3], %s1856_s21  ;;  %s429_s16 = scalar_lea.vmem (!%p2033_p2), [#allocation2], %s1859_s27 }
  0xe7   : > { %1454 = dma.done.wait (%p2034_p0), %s426_s18, 128  }
  0xe8   : > { %1456 = vsyncadd (%p2034_p0), %s426_s18, 4294967168  ;;  %s434_s9 = sand.u32 1, %s1573_s13   ;;  %s438_s19 = scalar_lea.vmem [#allocation5], %s1859_s27 }
  0xe9   : > { %s435_s17 = scalar_lea.sflag [#allocation6], %s434_s9 }
  0xea   : > { %1458 = dma.done.wait (%p2034_p0), %s435_s17, 256  }
  0xeb   : > { %1460 = vsyncadd (%p2034_p0), %s435_s17, 4294967040  ;;  %s447_s20 = scalar_lea.vmem [#allocation7], %s1859_s27  ;;  %s453_s28 = scalar_lea.sflag [#allocation9], %s434_s9 }
  0xec   : > { %s456_s30 = scalar_lea.vmem [#allocation8], %s1859_s27 }
  0xed   : > { %1462 = dma.done.wait (%p2034_p0), %s453_s28, 256  }
  0xee   : > { %1464 = vsyncadd (%p2034_p0), %s453_s28, 4294967040  ;;  %s465_s0 = scalar_lea.vmem [#allocation10], %s1859_s27  ;;  %p2035_p10 = scmp.eq.s32.totalorder %s1573_s13, 0 }
  0xf0   : > { %1466 = dma.done.wait (%p2035_p10), [#allocation12], 4096   ;;  %p2036_p3 = pmov %p2035_p10 }
  0xf1   : > { %v1498_v0 = vmov 0.0|0.0   ;;  %vm1499_vm0 = vmmov 0   ;;  %v1500_v1 = vmov 0.0   ;;  %v562_v2 = vld [vmem:[#allocation13] sm:$0xff]  ;;  %v563_v3 = vld [vmem:[#allocation13 + $0x8] sm:$0xff]  ;;  %v564_v7 = vld [vmem:[#allocation13 + $0x10] sm:$0xff] }
  0xf2   : > { %1468 = vsyncadd (%p2036_p3), [#allocation12], 4294963200  ;;  %1063 = vmatprep.subr.bf16.mxu0 %v1498_v0  ;;  %1087 = vmatprep.subr.bf16.mxu1 %v1498_v0  ;;  %v546_v4 = vld [vmem:[#allocation11] sm:$0xff]  ;;  %v1064_v5 = vpack.c.bf16 %v563_v3, %v562_v2  ;;  %v547_v6 = vld [vmem:[#allocation11 + $0x8] sm:$0xff]  ;;  %p532_p9 = scmp.lt.s32.totalorder %s1573_s13, 1  ;;  %s2037_s8 = sld [smem:[#allocation29_spill]] }
  0xf3   : > { %1025 = vmatprep.mubr.msk.f32.mxu0 %vm1499_vm0, %v1500_v1  ;;  %1060 = vmatprep.mubr.msk.f32.mxu1 %vm1499_vm0, %v1500_v1  ;;  %v565_v8 = vld [vmem:[#allocation13 + $0x18] sm:$0xff]  ;;  %v1088_v9 = vpack.c.bf16 %v547_v6, %v546_v4  ;;  %v548_v10 = vld [vmem:[#allocation11 + $0x10] sm:$0xff]  ;;  %v566_v14 = vld [vmem:[#allocation13 + $0x20] sm:$0xff]  ;;  %s2038_s14 = sld [smem:[#allocation24_spill]]  ;;  %s956_s26 = sshll.u32 %s1573_s13, 7 }
  0xf4   : > { %v549_v11 = vld [vmem:[#allocation11 + $0x18] sm:$0xff]  ;;  %1065 = vmatpush3.bf16.msra.mxu0 %v1064_v5  ;;  %v1067_v12 = vpack.c.bf16 %v565_v8, %v564_v7  ;;  %v567_v15 = vld [vmem:[#allocation13 + $0x28] sm:$0xff]  ;;  %v550_v16 = vld [vmem:[#allocation11 + $0x20] sm:$0xff]  ;;  %s533_s15 = scalar_select %p532_p9, %s1573_s13, 1 }
  0xf5   : > { %1089 = vmatpush3.bf16.msra.mxu1 %v1088_v9  ;;  %1066 = vmatprep.subr.bf16.mxu0 %v1498_v0  ;;  %v1091_v13 = vpack.c.bf16 %v549_v11, %v548_v10  ;;  %v551_v17 = vld [vmem:[#allocation11 + $0x28] sm:$0xff]  ;;  %v1070_v18 = vpack.c.bf16 %v567_v15, %v566_v14  ;;  %v568_v20 = vld [vmem:[#allocation13 + $0x30] sm:$0xff]  ;;  %v569_v21 = vld [vmem:[#allocation13 + $0x38] sm:$0xff]  ;;  %s531_s25 = scalar_lea.vmem [#allocation14], %s1859_s27  ;;  %s2039_s9 = sld [smem:[#allocation30_spill]] }
  0xf6   : > { %1090 = vmatprep.subr.bf16.mxu1 %v1498_v0  ;;  %v1094_v19 = vpack.c.bf16 %v551_v17, %v550_v16  ;;  %v552_v22 = vld [vmem:[#allocation11 + $0x30] sm:$0xff]  ;;  %v553_v23 = vld [vmem:[#allocation11 + $0x38] sm:$0xff]  ;;  %v1073_v24 = vpack.c.bf16 %v569_v21, %v568_v20  ;;  %v570_v26 = vld [vmem:[#allocation13 + $0x40] sm:$0xff]  ;;  %s953_s3 = sshll.u32 %s533_s15, 3  ;;  %s742_s29 = sshll.u32 %s531_s25, 4  ;;  %s1925_s29 = int_to_ptr.vmem [resolvable:$true] %s742_s29 }
  0xf7   : > { %v1097_v25 = vpack.c.bf16 %v553_v23, %v552_v22  ;;  %v571_v27 = vld [vmem:[#allocation13 + $0x48] sm:$0xff]  ;;  %v554_v28 = vld [vmem:[#allocation11 + $0x40] sm:$0xff]  ;;  %v572_v32 = vld [vmem:[#allocation13 + $0x50] sm:$0xff]  ;;  %s535_s24 = scalar_lea.vmem %s1972_s5, %s953_s3  ;;  %s1501_s13 = smov [#allocation14]  }
  0xf8   : > { %1068 = vmatpush3.bf16.msra.mxu0 %v1067_v12  ;;  %v555_v29 = vld [vmem:[#allocation11 + $0x48] sm:$0xff]  ;;  %v1076_v30 = vpack.c.bf16 %v571_v27, %v570_v26  ;;  %v573_v33 = vld [vmem:[#allocation13 + $0x58] sm:$0xff]  ;;  %v556_v34 = vld [vmem:[#allocation11 + $0x50] sm:$0xff]  ;;  %s1413_s27 = sshll.u32 %s1501_s13, 4  ;;  %s1414_s27 = int_to_ptr.vmem [resolvable:$false] %s1413_s27 }
  0xf9   : > { %1092 = vmatpush3.bf16.msra.mxu1 %v1091_v13  ;;  %1069 = vmatprep.subr.bf16.mxu0 %v1498_v0  ;;  %v1100_v31 = vpack.c.bf16 %v555_v29, %v554_v28  ;;  %v557_v35 = vld [vmem:[#allocation11 + $0x58] sm:$0xff]  ;;  %v1079_v36 = vpack.c.bf16 %v573_v33, %v572_v32  ;;  %v574_v38 = vld [vmem:[#allocation13 + $0x60] sm:$0xff]  ;;  %v575_v39 = vld [vmem:[#allocation13 + $0x68] sm:$0xff]  ;;  %p2040_p5 = scmp.ne.s32.totalorder %s2038_s14, 0  ;;  %s1415_s28 = scalar_lea.vmem %s1414_s27, 256 }
  0xfa   : > { %1093 = vmatprep.subr.bf16.mxu1 %v1498_v0  ;;  %v1103_v37 = vpack.c.bf16 %v557_v35, %v556_v34  ;;  %v558_v40 = vld [vmem:[#allocation11 + $0x60] sm:$0xff]  ;;  %v559_v41 = vld [vmem:[#allocation11 + $0x68] sm:$0xff]  ;;  %v1082_v42 = vpack.c.bf16 %v575_v39, %v574_v38  ;;  %v576_v43 = vld [vmem:[#allocation13 + $0x70] sm:$0xff]  ;;  %p1416_p4 = scmp.lt.s32.totalorder %s1925_s29, %s1414_s27 }
  0xfb   : > { %v541_v44 = vld [vmem:[%s456_s30] sm:$0xff]  ;;  %v542_v45 = vld [vmem:[%s465_s0] sm:$0xff]  ;;  %v1106_v46 = vpack.c.bf16 %v559_v41, %v558_v40  ;;  %s1923_s17 = scalar_lea.hbm %s2039_s9, %s956_s26 }
  0xfc   : > { %1071 = vmatpush3.bf16.msra.mxu0 %v1070_v18  ;;  %v577_v47 = vld [vmem:[#allocation13 + $0x78] sm:$0xff]  ;;  %v537_v49 = vld [vmem:[%s438_s19] sm:$0xff]  ;;  %v560_v50 = vld [vmem:[#allocation11 + $0x70] sm:$0xff]  ;;  %v543_v52 = vadd.f32 %v542_v45, %v541_v44  ;;  %s729_s19 = scalar_lea.sflag [#allocation4], %s1856_s21 }
  0xfd   : > { %1095 = vmatpush3.bf16.msra.mxu1 %v1094_v19  ;;  %1072 = vmatprep.subr.bf16.mxu0 %v1498_v0  ;;  %v536_v48 = vld [vmem:[%s429_s16] sm:$0xff]  ;;  %v1085_v53 = vpack.c.bf16 %v577_v47, %v576_v43 }
  0xfe   : > { %1096 = vmatprep.subr.bf16.mxu1 %v1498_v0  ;;  %v561_v51 = vld [vmem:[#allocation11 + $0x78] sm:$0xff]  ;;  %v544_v54 = vld [vmem:[%s535_s24] sm:$0xff]  ;;  %v538_v55 = vadd.f32 %v537_v49, %v536_v48 }
  0xff   : > { %v1109_v56 = vpack.c.bf16 %v561_v51, %v560_v50  ;;  %v539_v57 = vld [vmem:[%s447_s20] sm:$0xff]  ;;  %v545_v58 = vadd.f32 %v544_v54, %v543_v52  ;;  %s1409_s20 = scalar_lea.vmem %s1925_s29, 128 }
 0x100   : > { %1074 = vmatpush3.bf16.msra.mxu0 %v1073_v24  ;;  %v540_v59 = vadd.f32 %v539_v57, %v538_v55  ;;  %v954_v62 = vld [vmem:[%s2037_s8] ss:$0 sm:$0xff]  ;;  %p1410_p11 = scmp.ne.s32.totalorder %s1925_s29, %s1409_s20  ;;  %p1417_p6 = scmp.lt.s32.totalorder %s1415_s28, %s1409_s20 }
 0x101   : > { %1098 = vmatpush3.bf16.msra.mxu1 %v1097_v25  ;;  %1075 = vmatprep.subr.bf16.mxu0 %v1498_v0 }
 0x102   : > { %1099 = vmatprep.subr.bf16.mxu1 %v1498_v0  ;;  %p1411_p12 = pnand %p1410_p11, %p2040_p5  ;;  %p1418_p8 = por %p1417_p6, %p1416_p4 }
 0x104   : > { %1077 = vmatpush3.bf16.msra.mxu0 %v1076_v30  ;;  %p1412_p1 = pneg %p1411_p12 }
 0x105   : > { %1101 = vmatpush3.bf16.msra.mxu1 %v1100_v31  ;;  %1078 = vmatprep.subr.bf16.mxu0 %v1498_v0 }
 0x106   : > { %1102 = vmatprep.subr.bf16.mxu1 %v1498_v0  ;;  %p1419_p7 = pnand %p1418_p8, %p1412_p1 }
 0x108   : > { %1080 = vmatpush3.bf16.msra.mxu0 %v1079_v36 }
 0x109   : > { %1104 = vmatpush3.bf16.msra.mxu1 %v1103_v37  ;;  %1081 = vmatprep.subr.bf16.mxu0 %v1498_v0 }
 0x10a   : > { %1105 = vmatprep.subr.bf16.mxu1 %v1498_v0 }
 0x10c   : > { %1083 = vmatpush3.bf16.msra.mxu0 %v1082_v42 }
 0x10d   : > { %1107 = vmatpush3.bf16.msra.mxu1 %v1106_v46  ;;  %1084 = vmatprep.subr.bf16.mxu0 %v1498_v0 }
 0x10e   : > { %1108 = vmatprep.subr.bf16.mxu1 %v1498_v0 }
 0x110   : > { %1086 = vmatpush3.bf16.msra.mxu0 %v1085_v53 }
 0x111   : > { %1110 = vmatpush3.bf16.msra.mxu1 %v1109_v56 }
 0x113   : > { %1026 = vmatmul.mubr.f32.vlgmr.msra.gmra.mrb[0].mxu0 %v545_v58 }
 0x114   : > { %1061 = vmatmul.mubr.f32.vlgmr.msra.gmra.mrb[0].mxu1 %v540_v59 }
 0x1e6   : > { %v644_v60 = vpop.f32.mrb[0].mxu0 }
 0x1e7   : > { %v714_v61 = vpop.f32.mrb[0].mxu1  ;;  %v1027_v63 = vpop.f32.mrb[1].mxu0 }
 0x1e8   : > { %v715_v1 = vadd.f32 %v714_v61, %v644_v60  ;;  %v1062_v2 = vpop.f32.mrb[1].mxu1 }
 0x1ea   : > { %v725_v0 = vadd.f32 %v954_v62, %v715_v1 }
 0x1ec   : > { %v726_v3 = vmax.f32 %v725_v0, 0.0 }
 0x1ee   : > { %727 = vst [vmem:[%s531_s25] sm:$0xff] %v726_v3 }
 0x1ef   : > { %1422 = shalt.err (!%p1419_p7)
}
 0x1f0   : > { %s1423_s21 = scalar_lea.hbm %s1923_s17, 128  ;;  %s1427_s15 = scalar_lea.hbm %s2039_s9, 256 }
 0x1f1   : > { %p1424_p13 = scmp.ne.s32.totalorder %s1923_s17, %s1423_s21  ;;  %p1428_p10 = scmp.lt.u32.totalorder %s1923_s17, %s2039_s9 }
 0x1f2   : > { %p1429_p3 = scmp.lt.u32.totalorder %s1427_s15, %s1423_s21  ;;  %p1431_p11 = scmp.lt.u32.totalorder %s1423_s21, %s1923_s17 }
 0x1f3   : > { %p1425_p2 = pnand %p1424_p13, %p2040_p5 }
 0x1f4   : > { %p1430_p9 = por %p1429_p3, %p1428_p10 }
 0x1f5   : > { %p1426_p0 = pneg %p1425_p2 }
 0x1f6   : > { %p1432_p12 = por %p1431_p11, %p1430_p9 }
 0x1f8   : > { %p1433_p1 = pnand %p1432_p12, %p1426_p0 }
 0x1fa   : > { %1436 = shalt.err (!%p1433_p1)
}
 0x1fb   : > { %1129 = dma.vmem_to_hbm [thread:$0]  (%p2040_p5), %s1925_s29, 128, %s1923_s17, %s729_s19  }
 0x1fc PF: > { %s2041_s6 = sld [smem:[#allocation20_spill]]  ;;  %s2042_s24 = sld [smem:[#allocation21_spill]] }
 0x1fd   : > { %p2044_p6 = scmp.ge.s32.totalorder %s1487_s12, 2 }
 0x202   : > { %s754_s1 = sand.u32 1, %s2041_s6   ;;  %p2043_p4 = scmp.ne.s32.totalorder %s2042_s24, 0 }
 0x203   : > { %s755_s22 = scalar_lea.sflag [#allocation4], %s754_s1 }
 0x204   : > { %p1155_p8 = pnand %p2044_p6, %p2043_p4 }
 0x206   : > { %1470 = dma.done.wait (!%p1155_p8), %s755_s22, 128  }
 0x207   : > { %1472 = vsyncadd (!%p1155_p8), %s755_s22, 4294967168  ;;  %s2045_s12 = sld [smem:[#allocation22_spill]]  ;;  %s2046_s8 = sld [smem:[#allocation23_spill]] }
 0x208   : > { %s2047_s30 = smov %s1479_s10  ;;  %s2048_s10 = smov %s1483_s11 }
 0x20d   : > { %p29_p7 = scmp.ge.s32.totalorder %s2045_s12, 4   ;;  %s2049_s11 = smov %s2046_s8 }
 0x20f   :  { %31 = sbr.rel (!%p29_p7) target bundleno = 17 (0x11), region = 160 }
 0x216   :  { %760 = vsyncpa [#allocation3], 1 }
 0x217   :  { %762 = vsyncpa [#allocation3 + $0x1], 1 }
 0x218   :  { %763 = vsyncpa [#allocation6], 1 }
 0x219   :  { %765 = vsyncpa [#allocation6 + $0x1], 1 }
 0x21a   :  { %766 = vsyncpa [#allocation9], 1 }
 0x21b   :  { %768 = vsyncpa [#allocation9 + $0x1], 1 }
 0x21c   :  { %769 = vsyncpa [#allocation12], 1 }
 0x21d   :  { %770 = vsyncpa [#allocation4], 1 }
 0x21e   :  { %772 = vsyncpa [#allocation4 + $0x1], 1 }

</bundles_post_ra>
